<compile_context>
chip_gen: v5e
topology: v5e:2x2
jax: 0.10.0
libtpu: 0.0.40
codegen_flags: <defaults>
</compile_context>

<pallas_src>
import numpy as np
import jax
import jax.numpy as jnp
from jax import lax
from jax.experimental import pallas as pl
from jax.experimental.pallas import tpu as pltpu

DT = jnp.bfloat16                      # matmul-input / activation dtype


# ----------------------------------------------------------------------------
# generation-aware VMEM / tiling constants
# ----------------------------------------------------------------------------
def _vmem_capacity_bytes():
    try:
        return int(pltpu.get_tpu_info().vmem_capacity_bytes)
    except Exception:
        return 64 * 1024 * 1024        # conservative fallback (v7x per-core VMEM)


_VMEM_CAP = _vmem_capacity_bytes()
# 3/4 of physical VMEM: 96 MiB on v5e/v6e (128 MiB), 48 MiB on v7x (64 MiB).
VMEM_LIMIT = min((_VMEM_CAP * 3) // 4, 96 * 1024 * 1024)
TILE_VMEM_BUDGET = VMEM_LIMIT // 3     # headroom for weights + double buffering
MAX_TILE_LANES = 2048                  # big lane tiles ~= HBM roofline (>=512)
K_TARGET_3X3 = 256                     # MXU contraction-dim target (v6e/v7x)


def _round_up(x, m):
    return (x + m - 1) // m * m


def _pick_tile_1x1(M, cin, cout, has_residual):
    """Lane-tile for the 1x1 convs.  M is a multiple of 128 or <= 128."""
    if M % 128 != 0:
        return M                       # only hit for tiny M (<=128): full tile
    # bytes per lane column held in VMEM: bf16 in + bf16 out (double buffered),
    # f32 accumulator temp, optional bf16 residual (double buffered).
    per_col = 2 * 2 * cin + (4 + 4) * cout + (2 * 2 * cout if has_residual else 0)
    cap = max(128, min(MAX_TILE_LANES, TILE_VMEM_BUDGET // max(per_col, 1)))
    if M >= 1024:
        cap = min(cap, M // 2)         # keep >=2 M-tiles/image (v7x: 2 TCs pipeline)
    cap = max(128, (cap // 128) * 128)
    t = min(cap, M)
    while M % t != 0:
        t -= 128
    return t


def _groups_per_pack(groups, cgi):
    """How many groups to pack (block-diagonally) into one 3x3 matmul."""
    gpk = 1
    for d in range(1, groups + 1):
        if groups % d == 0 and 9 * d * cgi <= K_TARGET_3X3:
            gpk = d
    return gpk


# ----------------------------------------------------------------------------
# Pallas kernel: fused 1x1 conv  Y = relu?( W @ X + bias (+ residual) )
# (BN scale already folded into W at init.)
# ----------------------------------------------------------------------------
def _make_1x1_kernel(has_residual, has_relu):
    if has_residual:
        def kernel(x_ref, w_ref, b_ref, r_ref, o_ref):
            y = jnp.dot(w_ref[...], x_ref[...], preferred_element_type=jnp.float32)
            y = y + b_ref[...] + r_ref[...].astype(jnp.float32)
            if has_relu:
                y = jnp.maximum(y, 0.0)
            o_ref[...] = y.astype(o_ref.dtype)
    else:
        def kernel(x_ref, w_ref, b_ref, o_ref):
            y = jnp.dot(w_ref[...], x_ref[...], preferred_element_type=jnp.float32)
            y = y + b_ref[...]
            if has_relu:
                y = jnp.maximum(y, 0.0)
            o_ref[...] = y.astype(o_ref.dtype)
    return kernel


def conv1x1_bn(x, p, relu, residual=None):
    """x: (N, Cin, M) bf16 -> (N, Cout, M) bf16."""
    N, Cin, M = x.shape
    wk, b = p["wk"], p["b"]            # (Cout, Cin) bf16 (scale-folded), (Cout, 1) f32
    Cout = wk.shape[0]

    # pad M to a multiple of 128 when it is large and misaligned (lane-dense stores)
    Mp = M if (M % 128 == 0 or M <= 128) else _round_up(M, 128)
    if Mp != M:
        # TODO(synk): propagate the lane-padded slab downstream instead of cropping.
        x = jnp.pad(x, ((0, 0), (0, 0), (0, Mp - M)))
        if residual is not None:
            residual = jnp.pad(residual, ((0, 0), (0, 0), (0, Mp - M)))

    t = _pick_tile_1x1(Mp, Cin, Cout, residual is not None)

    in_specs = [
        pl.BlockSpec((None, Cin, t), lambda n, j: (n, 0, j)),
        pl.BlockSpec((Cout, Cin), lambda n, j: (0, 0)),
        pl.BlockSpec((Cout, 1), lambda n, j: (0, 0)),
    ]
    args = [x, wk, b]
    if residual is not None:
        in_specs.append(pl.BlockSpec((None, Cout, t), lambda n, j: (n, 0, j)))
        args.append(residual)

    out = pl.pallas_call(
        _make_1x1_kernel(residual is not None, relu),
        out_shape=jax.ShapeDtypeStruct((N, Cout, Mp), DT),
        grid=(N, Mp // t),
        in_specs=in_specs,
        out_specs=pl.BlockSpec((None, Cout, t), lambda n, j: (n, 0, j)),
        compiler_params=pltpu.CompilerParams(
            dimension_semantics=("parallel", "parallel"),
            vmem_limit_bytes=VMEM_LIMIT),
    )(*args)
    return out if Mp == M else out[:, :, :M]


# ----------------------------------------------------------------------------
# Pallas kernel: grouped 3x3 conv.  Per grid step: build ONE (9*Cpi, Mo)
# operand in VMEM scratch (9 static lane slices, pre-masked copies for the
# W edges), then a SINGLE block-diagonal matmul over all packed groups.
# ----------------------------------------------------------------------------
def _make_gconv3x3_kernel(Mo, Cpi, offs, srcs, n_masks):
    def kernel(x_ref, w_ref, m_ref, b_ref, o_ref, xcat_ref):
        # x_ref: (Cpi, L) bf16, w_ref: (Cpo, 9*Cpi) bf16 (block-diagonal),
        # m_ref: (n_masks, L) bf16, b_ref: (Cpo, 1) f32,
        # o_ref: (Cpo, Mo) bf16, xcat_ref: (9*Cpi, Mo) bf16 VMEM scratch.
        x = x_ref[...]
        masked = [x, x * m_ref[0:1, :]]            # unmasked, left-masked
        if n_masks == 2:
            masked.append(x * m_ref[1:2, :])       # right-masked (stride 1 only)
        for t in range(9):
            xs = masked[srcs[t]]
            xcat_ref[t * Cpi:(t + 1) * Cpi, :] = xs[:, offs[t]:offs[t] + Mo]
        y = jnp.dot(w_ref[...], xcat_ref[...], preferred_element_type=jnp.float32)
        y = y + b_ref[...]
        o_ref[...] = jnp.maximum(y, 0.0).astype(o_ref.dtype)
    return kernel


def conv3x3_grouped_bn_relu(y, p, stride, groups):
    """y: (N, Cb, H, W) bf16 -> (N, Cout, Ho*Wo) bf16 (groups channel-contiguous)."""
    N, Cb, H, W = y.shape
    wpk, bpk, gpk = p["wpk"], p["bpk"], p["gpk"]   # packed block-diag weights
    npk, Cpo = wpk.shape[0], wpk.shape[1]
    Cpi = wpk.shape[2] // 9
    Cout = npk * Cpo
    assert npk * Cpi == Cb

    yp = jnp.pad(y, ((0, 0), (0, 0), (1, 1), (0, 0)))        # pad H only
    if stride == 1:
        Ho, Wo = H, W
        buf = jnp.pad(yp.reshape(N, Cb, (H + 2) * W), ((0, 0), (0, 0), (1, 1)))
        offs = [kh * W + kw for kh in range(3) for kw in range(3)]
        srcs = [1 if kw == 0 else (2 if kw == 2 else 0)
                for kh in range(3) for kw in range(3)]
        wrow = W
    else:
        assert stride == 2 and H % 2 == 0 and W % 2 == 0
        Ho, Wo = H // 2, W // 2
        Lph = (Ho + 1) * Wo
        # TODO(synk): fuse this phase split into the shrink conv's out_specs
        # (it is an extra HBM pass of the bottleneck activation).
        phases = [yp[:, :, a::2, b::2].reshape(N, Cb, Lph)
                  for a in range(2) for b in range(2)]
        buf = jnp.pad(jnp.concatenate(phases, axis=2), ((0, 0), (0, 0), (1, 1)))
        offs, srcs = [], []
        for kh in range(3):
            for kw in range(3):
                a, qh = kh % 2, kh // 2
                # NOTE: relies on Python floor division: (kw-1)//2 == -1 for kw==0,
                # compensated by the 1-lane left pad of `buf`.  Do not "simplify".
                b, qw = (kw - 1) % 2, (kw - 1) // 2
                offs.append(1 + (2 * a + b) * Lph + qh * Wo + qw)
                srcs.append(1 if kw == 0 else 0)
        wrow = Wo
    Mo = Ho * Wo
    L = buf.shape[-1]
    n_masks = 2 if stride == 1 else 1

    # pre-masked buffer columns: left mask kills reads that wrapped to the
    # previous row's last column (kw==0 taps), right mask the symmetric case.
    col = (np.arange(L) - 1) % wrow
    rows = [col != wrow - 1]
    if n_masks == 2:
        rows.append(col != 0)
    masks = jnp.asarray(np.stack(rows).astype(np.float32), dtype=DT)

    kernel = _make_gconv3x3_kernel(Mo, Cpi, tuple(offs), tuple(srcs), n_masks)
    out = pl.pallas_call(
        kernel,
        out_shape=jax.ShapeDtypeStruct((N, Cout, Mo), DT),
        grid=(N, npk),
        in_specs=[
            pl.BlockSpec((None, Cpi, L), lambda n, g: (n, g, 0)),
            pl.BlockSpec((None, Cpo, 9 * Cpi), lambda n, g: (g, 0, 0)),
            pl.BlockSpec((n_masks, L), lambda n, g: (0, 0)),
            pl.BlockSpec((None, Cpo, 1), lambda n, g: (g, 0, 0)),
        ],
        out_specs=pl.BlockSpec((None, Cpo, Mo), lambda n, g: (n, g, 0)),
        scratch_shapes=[pltpu.VMEM((9 * Cpi, Mo), DT)],
        compiler_params=pltpu.CompilerParams(
            dimension_semantics=("parallel", "parallel"),
            vmem_limit_bytes=VMEM_LIMIT),
    )(buf, wpk, masks, bpk)
    return out                                               # (N, Cout, Mo)


def avgpool2(x):
    # TODO(synk): fuse this 2x2 average pool into the shortcut conv1x1 prologue.
    N, C, H, W = x.shape
    y = x.astype(jnp.float32).reshape(N, C, H // 2, 2, W // 2, 2).mean(axis=(3, 5))
    return y.astype(DT)


# ----------------------------------------------------------------------------
# Parameter init (deterministic), eval-mode BN folded into weights + bias
# ----------------------------------------------------------------------------
def init_conv_bn_params(key, cin, cout, ksize, groups):
    k1, k2, k3, k4, k5, k6 = jax.random.split(key, 6)
    fan_in = (cin // groups) * ksize * ksize
    w = jax.random.normal(k1, (cout, cin // groups, ksize, ksize), jnp.float32)
    w = w / jnp.sqrt(jnp.float32(fan_in))
    conv_b = 0.1 * jax.random.normal(k2, (cout,), jnp.float32)
    gamma = 1.0 + 0.1 * jax.random.normal(k3, (cout,), jnp.float32)
    beta = 0.1 * jax.random.normal(k4, (cout,), jnp.float32)
    mean = 0.1 * jax.random.normal(k5, (cout,), jnp.float32)
    var = jnp.abs(jax.random.normal(k6, (cout,), jnp.float32)) + 0.5
    eps = 1e-9                          # matches BatchNorm2d(eps=1e-09)
    scale = gamma / jnp.sqrt(var + eps)
    bias = beta + scale * (conv_b - mean)
    # fold BN scale into the conv weight in f32 BEFORE the single bf16 cast.
    w_folded = w * scale[:, None, None, None]
    p = dict(w_folded=w_folded, bias=bias)
    if ksize == 1:
        p["wk"] = w_folded.reshape(cout, cin).astype(DT)
        p["b"] = bias.reshape(cout, 1)
    else:                                                    # grouped 3x3
        cgo, cgi = cout // groups, cin // groups
        gpk = _groups_per_pack(groups, cgi)                  # groups per matmul pack
        npk = groups // gpk
        w5 = w_folded.reshape(npk, gpk, cgo, cgi, 3, 3)
        eye = jnp.eye(gpk, dtype=jnp.float32)
        # block-diagonal pack: (p, g*Cgo+co, ((kh*3+kw)*gpk + h)*cgi + ci)
        wb = jnp.einsum('pgoikl,gh->pgoklhi', w5, eye)
        p["wpk"] = wb.reshape(npk, gpk * cgo, 9 * gpk * cgi).astype(DT)
        p["bpk"] = bias.reshape(npk, gpk * cgo, 1)
        p["gpk"] = gpk
    return p


def init_resnext_group(key, stages, channels_input, channels, group, dsp=True):
    blocks = []
    for i in range(stages):
        stride = 2 if (i == 0 and dsp) else 1
        has_proj = (i == 0)
        cin = channels_input if i == 0 else channels
        bottleneck = channels // 4
        assert bottleneck % group == 0 and (bottleneck // group) % 4 == 0
        key, k0, k1, k2, k3 = jax.random.split(key, 5)
        p = {}
        if has_proj:
            p["shortcut"] = init_conv_bn_params(k0, cin, channels, 1, 1)
        p["shrink"] = init_conv_bn_params(k1, cin, bottleneck, 1, 1)
        p["conv3"] = init_conv_bn_params(k2, bottleneck, bottleneck, 3, group)
        p["expand"] = init_conv_bn_params(k3, bottleneck, channels, 1, 1)
        blocks.append(dict(params=p, stride=stride, has_proj=has_proj, group=group))
    return blocks


# ----------------------------------------------------------------------------
# Forward pass (Pallas path, NCHW layout: channels on sublanes, H*W on lanes)
# ----------------------------------------------------------------------------
def resnext_block_fwd(x, blk):
    # x: (N, Cin, H, W) bf16
    p, stride, group = blk["params"], blk["stride"], blk["group"]
    N, Cin, H, W = x.shape
    Ho, Wo = H // stride, W // stride
    if blk["has_proj"]:
        xs = avgpool2(x) if stride == 2 else x
        proj = conv1x1_bn(xs.reshape(N, Cin, Ho * Wo), p["shortcut"], relu=False)
    else:
        proj = x.reshape(N, Cin, H * W)
    y = conv1x1_bn(x.reshape(N, Cin, H * W), p["shrink"], relu=True)
    Cb = y.shape[1]
    y = conv3x3_grouped_bn_relu(y.reshape(N, Cb, H, W), p["conv3"], stride, group)
    # expand conv (folded BN) + residual add + final ReLU fused in one kernel
    y = conv1x1_bn(y, p["expand"], relu=True, residual=proj)
    return y.reshape(N, -1, Ho, Wo)


def resnext_group_fwd(x_nchw, blocks):
    x = x_nchw.astype(DT)              # NCHW kept throughout: no layout transposes
    for blk in blocks:
        x = resnext_block_fwd(x, blk)
    return x.astype(jnp.float32)


# ----------------------------------------------------------------------------
# Pure-JAX reference (same folded bf16 weights / f32 accumulation numerics)
# ----------------------------------------------------------------------------
def _ref_conv_bn(x, p, stride, padding, groups, relu):
    y = lax.conv_general_dilated(
        x.astype(DT), p["w_folded"].astype(DT), (stride, stride),
        [(padding, padding), (padding, padding)],
        dimension_numbers=("NCHW", "OIHW", "NCHW"),
        feature_group_count=groups,
        preferred_element_type=jnp.float32)
    y = y + p["bias"][None, :, None, None]
    if relu:
        y = jnp.maximum(y, 0.0)
    return y


def ref_group_fwd(x_nchw, blocks):
    x = x_nchw.astype(DT)
    for blk in blocks:
        p, stride = blk["params"], blk["stride"]
        proj = x
        if blk["has_proj"]:
            if stride == 2:
                Nn, Cc, Hh, Ww = proj.shape
                proj = (proj.astype(jnp.float32)
                        .reshape(Nn, Cc, Hh // 2, 2, Ww // 2, 2)
                        .mean(axis=(3, 5)).astype(DT))
            proj = _ref_conv_bn(proj, p["shortcut"], 1, 0, 1, False).astype(DT)
        y = _ref_conv_bn(x, p["shrink"], 1, 0, 1, True).astype(DT)
        y = _ref_conv_bn(y, p["conv3"], stride, 1, blk["group"], True).astype(DT)
        y = _ref_conv_bn(y, p["expand"], 1, 0, 1, False)          # f32
        x = jnp.maximum(y + proj.astype(jnp.float32), 0.0).astype(DT)
    return x.astype(jnp.float32)


if __name__ == "__main__":
    key = jax.random.PRNGKey(0)
    kx, kp = jax.random.split(key)

    # channels=32 -> bottleneck=8, group=2 -> bottleneck/group=4 (multiple of 4)
    N, C_IN, H, W = 2, 16, 16, 16
    STAGES, CHANNELS, GROUP = 2, 32, 2

    x_nchw = jax.random.normal(kx, (N, C_IN, H, W), jnp.float32)
    blocks = init_resnext_group(kp, STAGES, C_IN, CHANNELS, GROUP, dsp=True)

    fwd = jax.jit(lambda x: resnext_group_fwd(x, blocks))
    out = jax.block_until_ready(fwd(x_nchw))
    assert out.shape == (N, CHANNELS, H // 2, W // 2), out.shape

    ref = jax.block_until_ready(ref_group_fwd(x_nchw, blocks))
    np.testing.assert_allclose(np.asarray(out), np.asarray(ref),
                               rtol=2e-2, atol=2e-2)

    print("KERNEL_OK")
</pallas_src>

<mosaic_0001>
module attributes {stable_mosaic.version = 11 : i64} {
  func.func @kernel(%arg0: i32, %arg1: i32, %arg2: memref<1x16x256xbf16, #tpu.memory_space<vmem>>, %arg3: memref<8x16xbf16, #tpu.memory_space<vmem>>, %arg4: memref<8x1xf32, #tpu.memory_space<vmem>>, %arg5: memref<1x8x256xbf16, #tpu.memory_space<vmem>>) attributes {dimension_semantics = [#tpu.dimension_semantics<parallel>, #tpu.dimension_semantics<parallel>], iteration_bounds = array<i64: 2, 1>, scalar_prefetch = 0 : i64, scratch_operands = 0 : i64, tpu.core_type = #tpu.core_type<tc>, window_params = [{transform_indices = @transform_0, window_bounds = array<i64: 1, 16, 256>}, {pipeline_mode = #tpu.pipeline_mode<synchronous>, transform_indices = @transform_1, window_bounds = array<i64: 8, 16>}, {pipeline_mode = #tpu.pipeline_mode<synchronous>, transform_indices = @transform_2, window_bounds = array<i64: 8, 1>}, {transform_indices = @transform_3, window_bounds = array<i64: 1, 8, 256>}]} {
    %c0 = arith.constant 0 : index
    %c0_0 = arith.constant 0 : index
    %0 = vector.load %arg3[%c0, %c0_0] : memref<8x16xbf16, #tpu.memory_space<vmem>>, vector<8x16xbf16>
    %c0_1 = arith.constant 0 : index
    %c0_2 = arith.constant 0 : index
    %c0_3 = arith.constant 0 : index
    %1 = vector.load %arg2[%c0_1, %c0_2, %c0_3] : memref<1x16x256xbf16, #tpu.memory_space<vmem>>, vector<1x16x256xbf16>
    %2 = vector.shape_cast %1 : vector<1x16x256xbf16> to vector<16x256xbf16>
    %cst = arith.constant dense<0.000000e+00> : vector<8x256xf32>
    %3 = tpu.matmul %0, %2, %cst {dimension_numbers = #tpu.dot_dimension_numbers<[1], [0], [0], [1], [0, 0, 1, 1], [], []>} : vector<8x16xbf16>, vector<16x256xbf16>, vector<8x256xf32> -> vector<8x256xf32>
    %c0_4 = arith.constant 0 : index
    %c0_5 = arith.constant 0 : index
    %4 = vector.load %arg4[%c0_4, %c0_5] : memref<8x1xf32, #tpu.memory_space<vmem>>, vector<8x1xf32>
    %5 = vector.broadcast %4 : vector<8x1xf32> to vector<8x256xf32>
    %6 = arith.addf %3, %5 : vector<8x256xf32>
    %cst_6 = arith.constant 0.000000e+00 : f32
    %7 = vector.broadcast %cst_6 : f32 to vector<8x256xf32>
    %8 = arith.maximumf %6, %7 : vector<8x256xf32>
    %9 = arith.truncf %8 : vector<8x256xf32> to vector<8x256xbf16>
    %c0_7 = arith.constant 0 : index
    %c0_8 = arith.constant 0 : index
    %c0_9 = arith.constant 0 : index
    %10 = vector.load %arg5[%c0_7, %c0_8, %c0_9] : memref<1x8x256xbf16, #tpu.memory_space<vmem>>, vector<1x8x256xbf16>
    %11 = vector.shape_cast %10 : vector<1x8x256xbf16> to vector<8x256xbf16>
    %12 = vector.shape_cast %9 : vector<8x256xbf16> to vector<1x8x256xbf16>
    tpu.vector_store %arg5[%c0_7, %c0_8, %c0_9], %12 {strides = array<i32>} : memref<1x8x256xbf16, #tpu.memory_space<vmem>>, vector<1x8x256xbf16>,
    return
  }
  func.func @transform_0(%arg0: i32, %arg1: i32) -> (i32, i32, i32) {
    %c0_i32 = arith.constant 0 : i32
    %c0_i32_0 = arith.constant 0 : i32
    return %arg0, %c0_i32, %arg1 : i32, i32, i32
  }
  func.func @transform_1(%arg0: i32, %arg1: i32) -> (i32, i32) {
    %c0_i32 = arith.constant 0 : i32
    %c0_i32_0 = arith.constant 0 : i32
    %c0_i32_1 = arith.constant 0 : i32
    return %c0_i32, %c0_i32_0 : i32, i32
  }
  func.func @transform_2(%arg0: i32, %arg1: i32) -> (i32, i32) {
    %c0_i32 = arith.constant 0 : i32
    %c0_i32_0 = arith.constant 0 : i32
    %c0_i32_1 = arith.constant 0 : i32
    return %c0_i32, %c0_i32_0 : i32, i32
  }
  func.func @transform_3(%arg0: i32, %arg1: i32) -> (i32, i32, i32) {
    %c0_i32 = arith.constant 0 : i32
    %c0_i32_0 = arith.constant 0 : i32
    return %arg0, %c0_i32, %arg1 : i32, i32, i32
  }
}

module attributes {stable_mosaic.version = 11 : i64} {
  func.func @kernel(%arg0: i32, %arg1: i32, %arg2: memref<1x8x290xbf16, #tpu.memory_space<vmem>>, %arg3: memref<1x8x72xbf16, #tpu.memory_space<vmem>>, %arg4: memref<1x290xbf16, #tpu.memory_space<vmem>>, %arg5: memref<1x8x1xf32, #tpu.memory_space<vmem>>, %arg6: memref<1x8x64xbf16, #tpu.memory_space<vmem>>, %arg7: memref<72x64xbf16, #tpu.memory_space<vmem>>) attributes {dimension_semantics = [#tpu.dimension_semantics<parallel>, #tpu.dimension_semantics<parallel>], iteration_bounds = array<i64: 2, 1>, scalar_prefetch = 0 : i64, scratch_operands = 1 : i64, tpu.core_type = #tpu.core_type<tc>, window_params = [{transform_indices = @transform_0, window_bounds = array<i64: 1, 8, 290>}, {transform_indices = @transform_1, window_bounds = array<i64: 1, 8, 72>}, {pipeline_mode = #tpu.pipeline_mode<synchronous>, transform_indices = @transform_2, window_bounds = array<i64: 1, 290>}, {transform_indices = @transform_3, window_bounds = array<i64: 1, 8, 1>}, {transform_indices = @transform_4, window_bounds = array<i64: 1, 8, 64>}]} {
    %c0 = arith.constant 0 : index
    %c0_0 = arith.constant 0 : index
    %c0_1 = arith.constant 0 : index
    %0 = vector.load %arg2[%c0, %c0_0, %c0_1] : memref<1x8x290xbf16, #tpu.memory_space<vmem>>, vector<1x8x290xbf16>
    %1 = vector.shape_cast %0 : vector<1x8x290xbf16> to vector<8x290xbf16>
    %c0_2 = arith.constant 0 : index
    %c0_3 = arith.constant 0 : index
    %2 = vector.load %arg4[%c0_2, %c0_3] : memref<1x290xbf16, #tpu.memory_space<vmem>>, vector<1x290xbf16>
    %3 = vector.broadcast %2 : vector<1x290xbf16> to vector<8x290xbf16>
    %4 = arith.mulf %1, %3 : vector<8x290xbf16>
    %5 = vector.extract_strided_slice %4 {offsets = [0, 72], sizes = [8, 64], strides = [1, 1]} : vector<8x290xbf16> to vector<8x64xbf16>
    %c0_4 = arith.constant 0 : index
    %c0_5 = arith.constant 0 : index
    %6 = vector.load %arg7[%c0_4, %c0_5] : memref<72x64xbf16, #tpu.memory_space<vmem>>, vector<8x64xbf16>
    tpu.vector_store %arg7[%c0_4, %c0_5], %5 {strides = array<i32>} : memref<72x64xbf16, #tpu.memory_space<vmem>>, vector<8x64xbf16>,
    %7 = vector.extract_strided_slice %1 {offsets = [0, 1], sizes = [8, 64], strides = [1, 1]} : vector<8x290xbf16> to vector<8x64xbf16>
    %c8 = arith.constant 8 : index
    %c0_6 = arith.constant 0 : index
    %8 = vector.load %arg7[%c8, %c0_6] : memref<72x64xbf16, #tpu.memory_space<vmem>>, vector<8x64xbf16>
    tpu.vector_store %arg7[%c8, %c0_6], %7 {strides = array<i32>} : memref<72x64xbf16, #tpu.memory_space<vmem>>, vector<8x64xbf16>,
    %9 = vector.extract_strided_slice %1 {offsets = [0, 73], sizes = [8, 64], strides = [1, 1]} : vector<8x290xbf16> to vector<8x64xbf16>
    %c16 = arith.constant 16 : index
    %c0_7 = arith.constant 0 : index
    %10 = vector.load %arg7[%c16, %c0_7] : memref<72x64xbf16, #tpu.memory_space<vmem>>, vector<8x64xbf16>
    tpu.vector_store %arg7[%c16, %c0_7], %9 {strides = array<i32>} : memref<72x64xbf16, #tpu.memory_space<vmem>>, vector<8x64xbf16>,
    %11 = vector.extract_strided_slice %4 {offsets = [0, 216], sizes = [8, 64], strides = [1, 1]} : vector<8x290xbf16> to vector<8x64xbf16>
    %c24 = arith.constant 24 : index
    %c0_8 = arith.constant 0 : index
    %12 = vector.load %arg7[%c24, %c0_8] : memref<72x64xbf16, #tpu.memory_space<vmem>>, vector<8x64xbf16>
    tpu.vector_store %arg7[%c24, %c0_8], %11 {strides = array<i32>} : memref<72x64xbf16, #tpu.memory_space<vmem>>, vector<8x64xbf16>,
    %13 = vector.extract_strided_slice %1 {offsets = [0, 145], sizes = [8, 64], strides = [1, 1]} : vector<8x290xbf16> to vector<8x64xbf16>
    %c32 = arith.constant 32 : index
    %c0_9 = arith.constant 0 : index
    %14 = vector.load %arg7[%c32, %c0_9] : memref<72x64xbf16, #tpu.memory_space<vmem>>, vector<8x64xbf16>
    tpu.vector_store %arg7[%c32, %c0_9], %13 {strides = array<i32>} : memref<72x64xbf16, #tpu.memory_space<vmem>>, vector<8x64xbf16>,
    %15 = vector.extract_strided_slice %1 {offsets = [0, 217], sizes = [8, 64], strides = [1, 1]} : vector<8x290xbf16> to vector<8x64xbf16>
    %c40 = arith.constant 40 : index
    %c0_10 = arith.constant 0 : index
    %16 = vector.load %arg7[%c40, %c0_10] : memref<72x64xbf16, #tpu.memory_space<vmem>>, vector<8x64xbf16>
    tpu.vector_store %arg7[%c40, %c0_10], %15 {strides = array<i32>} : memref<72x64xbf16, #tpu.memory_space<vmem>>, vector<8x64xbf16>,
    %17 = vector.extract_strided_slice %4 {offsets = [0, 80], sizes = [8, 64], strides = [1, 1]} : vector<8x290xbf16> to vector<8x64xbf16>
    %c48 = arith.constant 48 : index
    %c0_11 = arith.constant 0 : index
    %18 = vector.load %arg7[%c48, %c0_11] : memref<72x64xbf16, #tpu.memory_space<vmem>>, vector<8x64xbf16>
    tpu.vector_store %arg7[%c48, %c0_11], %17 {strides = array<i32>} : memref<72x64xbf16, #tpu.memory_space<vmem>>, vector<8x64xbf16>,
    %19 = vector.extract_strided_slice %1 {offsets = [0, 9], sizes = [8, 64], strides = [1, 1]} : vector<8x290xbf16> to vector<8x64xbf16>
    %c56 = arith.constant 56 : index
    %c0_12 = arith.constant 0 : index
    %20 = vector.load %arg7[%c56, %c0_12] : memref<72x64xbf16, #tpu.memory_space<vmem>>, vector<8x64xbf16>
    tpu.vector_store %arg7[%c56, %c0_12], %19 {strides = array<i32>} : memref<72x64xbf16, #tpu.memory_space<vmem>>, vector<8x64xbf16>,
    %21 = vector.extract_strided_slice %1 {offsets = [0, 81], sizes = [8, 64], strides = [1, 1]} : vector<8x290xbf16> to vector<8x64xbf16>
    %c64 = arith.constant 64 : index
    %c0_13 = arith.constant 0 : index
    %22 = vector.load %arg7[%c64, %c0_13] : memref<72x64xbf16, #tpu.memory_space<vmem>>, vector<8x64xbf16>
    tpu.vector_store %arg7[%c64, %c0_13], %21 {strides = array<i32>} : memref<72x64xbf16, #tpu.memory_space<vmem>>, vector<8x64xbf16>,
    %c0_14 = arith.constant 0 : index
    %c0_15 = arith.constant 0 : index
    %c0_16 = arith.constant 0 : index
    %23 = vector.load %arg3[%c0_14, %c0_15, %c0_16] : memref<1x8x72xbf16, #tpu.memory_space<vmem>>, vector<1x8x72xbf16>
    %24 = vector.shape_cast %23 : vector<1x8x72xbf16> to vector<8x72xbf16>
    %c0_17 = arith.constant 0 : index
    %c0_18 = arith.constant 0 : index
    %25 = vector.load %arg7[%c0_17, %c0_18] : memref<72x64xbf16, #tpu.memory_space<vmem>>, vector<72x64xbf16>
    %cst = arith.constant dense<0.000000e+00> : vector<8x64xf32>
    %26 = tpu.matmul %24, %25, %cst {dimension_numbers = #tpu.dot_dimension_numbers<[1], [0], [0], [1], [0, 0, 1, 1], [], []>} : vector<8x72xbf16>, vector<72x64xbf16>, vector<8x64xf32> -> vector<8x64xf32>
    %c0_19 = arith.constant 0 : index
    %c0_20 = arith.constant 0 : index
    %c0_21 = arith.constant 0 : index
    %27 = vector.load %arg5[%c0_19, %c0_20, %c0_21] : memref<1x8x1xf32, #tpu.memory_space<vmem>>, vector<1x8x1xf32>
    %28 = vector.shape_cast %27 : vector<1x8x1xf32> to vector<8x1xf32>
    %29 = vector.broadcast %28 : vector<8x1xf32> to vector<8x64xf32>
    %30 = arith.addf %26, %29 : vector<8x64xf32>
    %cst_22 = arith.constant 0.000000e+00 : f32
    %31 = vector.broadcast %cst_22 : f32 to vector<8x64xf32>
    %32 = arith.maximumf %30, %31 : vector<8x64xf32>
    %33 = arith.truncf %32 : vector<8x64xf32> to vector<8x64xbf16>
    %c0_23 = arith.constant 0 : index
    %c0_24 = arith.constant 0 : index
    %c0_25 = arith.constant 0 : index
    %34 = vector.load %arg6[%c0_23, %c0_24, %c0_25] : memref<1x8x64xbf16, #tpu.memory_space<vmem>>, vector<1x8x64xbf16>
    %35 = vector.shape_cast %34 : vector<1x8x64xbf16> to vector<8x64xbf16>
    %36 = vector.shape_cast %33 : vector<8x64xbf16> to vector<1x8x64xbf16>
    tpu.vector_store %arg6[%c0_23, %c0_24, %c0_25], %36 {strides = array<i32>} : memref<1x8x64xbf16, #tpu.memory_space<vmem>>, vector<1x8x64xbf16>,
    return
  }
  func.func @transform_0(%arg0: i32, %arg1: i32) -> (i32, i32, i32) {
    %c0_i32 = arith.constant 0 : i32
    %c0_i32_0 = arith.constant 0 : i32
    return %arg0, %arg1, %c0_i32 : i32, i32, i32
  }
  func.func @transform_1(%arg0: i32, %arg1: i32) -> (i32, i32, i32) {
    %c0_i32 = arith.constant 0 : i32
    %c0_i32_0 = arith.constant 0 : i32
    %c0_i32_1 = arith.constant 0 : i32
    return %arg1, %c0_i32, %c0_i32_0 : i32, i32, i32
  }
  func.func @transform_2(%arg0: i32, %arg1: i32) -> (i32, i32) {
    %c0_i32 = arith.constant 0 : i32
    %c0_i32_0 = arith.constant 0 : i32
    %c0_i32_1 = arith.constant 0 : i32
    return %c0_i32, %c0_i32_0 : i32, i32
  }
  func.func @transform_3(%arg0: i32, %arg1: i32) -> (i32, i32, i32) {
    %c0_i32 = arith.constant 0 : i32
    %c0_i32_0 = arith.constant 0 : i32
    %c0_i32_1 = arith.constant 0 : i32
    return %arg1, %c0_i32, %c0_i32_0 : i32, i32, i32
  }
  func.func @transform_4(%arg0: i32, %arg1: i32) -> (i32, i32, i32) {
    %c0_i32 = arith.constant 0 : i32
    %c0_i32_0 = arith.constant 0 : i32
    return %arg0, %arg1, %c0_i32 : i32, i32, i32
  }
}

module attributes {stable_mosaic.version = 11 : i64} {
  func.func @kernel(%arg0: i32, %arg1: i32, %arg2: memref<1x8x64xbf16, #tpu.memory_space<vmem>>, %arg3: memref<32x8xbf16, #tpu.memory_space<vmem>>, %arg4: memref<32x1xf32, #tpu.memory_space<vmem>>, %arg5: memref<1x32x64xbf16, #tpu.memory_space<vmem>>, %arg6: memref<1x32x64xbf16, #tpu.memory_space<vmem>>) attributes {dimension_semantics = [#tpu.dimension_semantics<parallel>, #tpu.dimension_semantics<parallel>], iteration_bounds = array<i64: 2, 1>, scalar_prefetch = 0 : i64, scratch_operands = 0 : i64, tpu.core_type = #tpu.core_type<tc>, window_params = [{transform_indices = @transform_0, window_bounds = array<i64: 1, 8, 64>}, {pipeline_mode = #tpu.pipeline_mode<synchronous>, transform_indices = @transform_1, window_bounds = array<i64: 32, 8>}, {pipeline_mode = #tpu.pipeline_mode<synchronous>, transform_indices = @transform_2, window_bounds = array<i64: 32, 1>}, {transform_indices = @transform_3, window_bounds = array<i64: 1, 32, 64>}, {transform_indices = @transform_4, window_bounds = array<i64: 1, 32, 64>}]} {
    %c0 = arith.constant 0 : index
    %c0_0 = arith.constant 0 : index
    %0 = vector.load %arg3[%c0, %c0_0] : memref<32x8xbf16, #tpu.memory_space<vmem>>, vector<32x8xbf16>
    %c0_1 = arith.constant 0 : index
    %c0_2 = arith.constant 0 : index
    %c0_3 = arith.constant 0 : index
    %1 = vector.load %arg2[%c0_1, %c0_2, %c0_3] : memref<1x8x64xbf16, #tpu.memory_space<vmem>>, vector<1x8x64xbf16>
    %2 = vector.shape_cast %1 : vector<1x8x64xbf16> to vector<8x64xbf16>
    %cst = arith.constant dense<0.000000e+00> : vector<32x64xf32>
    %3 = tpu.matmul %0, %2, %cst {dimension_numbers = #tpu.dot_dimension_numbers<[1], [0], [0], [1], [0, 0, 1, 1], [], []>} : vector<32x8xbf16>, vector<8x64xbf16>, vector<32x64xf32> -> vector<32x64xf32>
    %c0_4 = arith.constant 0 : index
    %c0_5 = arith.constant 0 : index
    %4 = vector.load %arg4[%c0_4, %c0_5] : memref<32x1xf32, #tpu.memory_space<vmem>>, vector<32x1xf32>
    %5 = vector.broadcast %4 : vector<32x1xf32> to vector<32x64xf32>
    %6 = arith.addf %3, %5 : vector<32x64xf32>
    %c0_6 = arith.constant 0 : index
    %c0_7 = arith.constant 0 : index
    %c0_8 = arith.constant 0 : index
    %7 = vector.load %arg5[%c0_6, %c0_7, %c0_8] : memref<1x32x64xbf16, #tpu.memory_space<vmem>>, vector<1x32x64xbf16>
    %8 = vector.shape_cast %7 : vector<1x32x64xbf16> to vector<32x64xbf16>
    %9 = arith.extf %8 : vector<32x64xbf16> to vector<32x64xf32>
    %10 = arith.addf %6, %9 : vector<32x64xf32>
    %cst_9 = arith.constant 0.000000e+00 : f32
    %11 = vector.broadcast %cst_9 : f32 to vector<32x64xf32>
    %12 = arith.maximumf %10, %11 : vector<32x64xf32>
    %13 = arith.truncf %12 : vector<32x64xf32> to vector<32x64xbf16>
    %c0_10 = arith.constant 0 : index
    %c0_11 = arith.constant 0 : index
    %c0_12 = arith.constant 0 : index
    %14 = vector.load %arg6[%c0_10, %c0_11, %c0_12] : memref<1x32x64xbf16, #tpu.memory_space<vmem>>, vector<1x32x64xbf16>
    %15 = vector.shape_cast %14 : vector<1x32x64xbf16> to vector<32x64xbf16>
    %16 = vector.shape_cast %13 : vector<32x64xbf16> to vector<1x32x64xbf16>
    tpu.vector_store %arg6[%c0_10, %c0_11, %c0_12], %16 {strides = array<i32>} : memref<1x32x64xbf16, #tpu.memory_space<vmem>>, vector<1x32x64xbf16>,
    return
  }
  func.func @transform_0(%arg0: i32, %arg1: i32) -> (i32, i32, i32) {
    %c0_i32 = arith.constant 0 : i32
    %c0_i32_0 = arith.constant 0 : i32
    return %arg0, %c0_i32, %arg1 : i32, i32, i32
  }
  func.func @transform_1(%arg0: i32, %arg1: i32) -> (i32, i32) {
    %c0_i32 = arith.constant 0 : i32
    %c0_i32_0 = arith.constant 0 : i32
    %c0_i32_1 = arith.constant 0 : i32
    return %c0_i32, %c0_i32_0 : i32, i32
  }
  func.func @transform_2(%arg0: i32, %arg1: i32) -> (i32, i32) {
    %c0_i32 = arith.constant 0 : i32
    %c0_i32_0 = arith.constant 0 : i32
    %c0_i32_1 = arith.constant 0 : i32
    return %c0_i32, %c0_i32_0 : i32, i32
  }
  func.func @transform_3(%arg0: i32, %arg1: i32) -> (i32, i32, i32) {
    %c0_i32 = arith.constant 0 : i32
    %c0_i32_0 = arith.constant 0 : i32
    return %arg0, %c0_i32, %arg1 : i32, i32, i32
  }
  func.func @transform_4(%arg0: i32, %arg1: i32) -> (i32, i32, i32) {
    %c0_i32 = arith.constant 0 : i32
    %c0_i32_0 = arith.constant 0 : i32
    return %arg0, %c0_i32, %arg1 : i32, i32, i32
  }
}

module attributes {stable_mosaic.version = 11 : i64} {
  func.func @kernel(%arg0: i32, %arg1: i32, %arg2: memref<1x16x64xbf16, #tpu.memory_space<vmem>>, %arg3: memref<32x16xbf16, #tpu.memory_space<vmem>>, %arg4: memref<32x1xf32, #tpu.memory_space<vmem>>, %arg5: memref<1x32x64xbf16, #tpu.memory_space<vmem>>) attributes {dimension_semantics = [#tpu.dimension_semantics<parallel>, #tpu.dimension_semantics<parallel>], iteration_bounds = array<i64: 2, 1>, scalar_prefetch = 0 : i64, scratch_operands = 0 : i64, tpu.core_type = #tpu.core_type<tc>, window_params = [{transform_indices = @transform_0, window_bounds = array<i64: 1, 16, 64>}, {pipeline_mode = #tpu.pipeline_mode<synchronous>, transform_indices = @transform_1, window_bounds = array<i64: 32, 16>}, {pipeline_mode = #tpu.pipeline_mode<synchronous>, transform_indices = @transform_2, window_bounds = array<i64: 32, 1>}, {transform_indices = @transform_3, window_bounds = array<i64: 1, 32, 64>}]} {
    %c0 = arith.constant 0 : index
    %c0_0 = arith.constant 0 : index
    %0 = vector.load %arg3[%c0, %c0_0] : memref<32x16xbf16, #tpu.memory_space<vmem>>, vector<32x16xbf16>
    %c0_1 = arith.constant 0 : index
    %c0_2 = arith.constant 0 : index
    %c0_3 = arith.constant 0 : index
    %1 = vector.load %arg2[%c0_1, %c0_2, %c0_3] : memref<1x16x64xbf16, #tpu.memory_space<vmem>>, vector<1x16x64xbf16>
    %2 = vector.shape_cast %1 : vector<1x16x64xbf16> to vector<16x64xbf16>
    %cst = arith.constant dense<0.000000e+00> : vector<32x64xf32>
    %3 = tpu.matmul %0, %2, %cst {dimension_numbers = #tpu.dot_dimension_numbers<[1], [0], [0], [1], [0, 0, 1, 1], [], []>} : vector<32x16xbf16>, vector<16x64xbf16>, vector<32x64xf32> -> vector<32x64xf32>
    %c0_4 = arith.constant 0 : index
    %c0_5 = arith.constant 0 : index
    %4 = vector.load %arg4[%c0_4, %c0_5] : memref<32x1xf32, #tpu.memory_space<vmem>>, vector<32x1xf32>
    %5 = vector.broadcast %4 : vector<32x1xf32> to vector<32x64xf32>
    %6 = arith.addf %3, %5 : vector<32x64xf32>
    %7 = arith.truncf %6 : vector<32x64xf32> to vector<32x64xbf16>
    %c0_6 = arith.constant 0 : index
    %c0_7 = arith.constant 0 : index
    %c0_8 = arith.constant 0 : index
    %8 = vector.load %arg5[%c0_6, %c0_7, %c0_8] : memref<1x32x64xbf16, #tpu.memory_space<vmem>>, vector<1x32x64xbf16>
    %9 = vector.shape_cast %8 : vector<1x32x64xbf16> to vector<32x64xbf16>
    %10 = vector.shape_cast %7 : vector<32x64xbf16> to vector<1x32x64xbf16>
    tpu.vector_store %arg5[%c0_6, %c0_7, %c0_8], %10 {strides = array<i32>} : memref<1x32x64xbf16, #tpu.memory_space<vmem>>, vector<1x32x64xbf16>,
    return
  }
  func.func @transform_0(%arg0: i32, %arg1: i32) -> (i32, i32, i32) {
    %c0_i32 = arith.constant 0 : i32
    %c0_i32_0 = arith.constant 0 : i32
    return %arg0, %c0_i32, %arg1 : i32, i32, i32
  }
  func.func @transform_1(%arg0: i32, %arg1: i32) -> (i32, i32) {
    %c0_i32 = arith.constant 0 : i32
    %c0_i32_0 = arith.constant 0 : i32
    %c0_i32_1 = arith.constant 0 : i32
    return %c0_i32, %c0_i32_0 : i32, i32
  }
  func.func @transform_2(%arg0: i32, %arg1: i32) -> (i32, i32) {
    %c0_i32 = arith.constant 0 : i32
    %c0_i32_0 = arith.constant 0 : i32
    %c0_i32_1 = arith.constant 0 : i32
    return %c0_i32, %c0_i32_0 : i32, i32
  }
  func.func @transform_3(%arg0: i32, %arg1: i32) -> (i32, i32, i32) {
    %c0_i32 = arith.constant 0 : i32
    %c0_i32_0 = arith.constant 0 : i32
    return %arg0, %c0_i32, %arg1 : i32, i32, i32
  }
}

module attributes {stable_mosaic.version = 11 : i64} {
  func.func @kernel(%arg0: i32, %arg1: i32, %arg2: memref<1x32x64xbf16, #tpu.memory_space<vmem>>, %arg3: memref<8x32xbf16, #tpu.memory_space<vmem>>, %arg4: memref<8x1xf32, #tpu.memory_space<vmem>>, %arg5: memref<1x8x64xbf16, #tpu.memory_space<vmem>>) attributes {dimension_semantics = [#tpu.dimension_semantics<parallel>, #tpu.dimension_semantics<parallel>], iteration_bounds = array<i64: 2, 1>, scalar_prefetch = 0 : i64, scratch_operands = 0 : i64, tpu.core_type = #tpu.core_type<tc>, window_params = [{transform_indices = @transform_0, window_bounds = array<i64: 1, 32, 64>}, {pipeline_mode = #tpu.pipeline_mode<synchronous>, transform_indices = @transform_1, window_bounds = array<i64: 8, 32>}, {pipeline_mode = #tpu.pipeline_mode<synchronous>, transform_indices = @transform_2, window_bounds = array<i64: 8, 1>}, {transform_indices = @transform_3, window_bounds = array<i64: 1, 8, 64>}]} {
    %c0 = arith.constant 0 : index
    %c0_0 = arith.constant 0 : index
    %0 = vector.load %arg3[%c0, %c0_0] : memref<8x32xbf16, #tpu.memory_space<vmem>>, vector<8x32xbf16>
    %c0_1 = arith.constant 0 : index
    %c0_2 = arith.constant 0 : index
    %c0_3 = arith.constant 0 : index
    %1 = vector.load %arg2[%c0_1, %c0_2, %c0_3] : memref<1x32x64xbf16, #tpu.memory_space<vmem>>, vector<1x32x64xbf16>
    %2 = vector.shape_cast %1 : vector<1x32x64xbf16> to vector<32x64xbf16>
    %cst = arith.constant dense<0.000000e+00> : vector<8x64xf32>
    %3 = tpu.matmul %0, %2, %cst {dimension_numbers = #tpu.dot_dimension_numbers<[1], [0], [0], [1], [0, 0, 1, 1], [], []>} : vector<8x32xbf16>, vector<32x64xbf16>, vector<8x64xf32> -> vector<8x64xf32>
    %c0_4 = arith.constant 0 : index
    %c0_5 = arith.constant 0 : index
    %4 = vector.load %arg4[%c0_4, %c0_5] : memref<8x1xf32, #tpu.memory_space<vmem>>, vector<8x1xf32>
    %5 = vector.broadcast %4 : vector<8x1xf32> to vector<8x64xf32>
    %6 = arith.addf %3, %5 : vector<8x64xf32>
    %cst_6 = arith.constant 0.000000e+00 : f32
    %7 = vector.broadcast %cst_6 : f32 to vector<8x64xf32>
    %8 = arith.maximumf %6, %7 : vector<8x64xf32>
    %9 = arith.truncf %8 : vector<8x64xf32> to vector<8x64xbf16>
    %c0_7 = arith.constant 0 : index
    %c0_8 = arith.constant 0 : index
    %c0_9 = arith.constant 0 : index
    %10 = vector.load %arg5[%c0_7, %c0_8, %c0_9] : memref<1x8x64xbf16, #tpu.memory_space<vmem>>, vector<1x8x64xbf16>
    %11 = vector.shape_cast %10 : vector<1x8x64xbf16> to vector<8x64xbf16>
    %12 = vector.shape_cast %9 : vector<8x64xbf16> to vector<1x8x64xbf16>
    tpu.vector_store %arg5[%c0_7, %c0_8, %c0_9], %12 {strides = array<i32>} : memref<1x8x64xbf16, #tpu.memory_space<vmem>>, vector<1x8x64xbf16>,
    return
  }
  func.func @transform_0(%arg0: i32, %arg1: i32) -> (i32, i32, i32) {
    %c0_i32 = arith.constant 0 : i32
    %c0_i32_0 = arith.constant 0 : i32
    return %arg0, %c0_i32, %arg1 : i32, i32, i32
  }
  func.func @transform_1(%arg0: i32, %arg1: i32) -> (i32, i32) {
    %c0_i32 = arith.constant 0 : i32
    %c0_i32_0 = arith.constant 0 : i32
    %c0_i32_1 = arith.constant 0 : i32
    return %c0_i32, %c0_i32_0 : i32, i32
  }
  func.func @transform_2(%arg0: i32, %arg1: i32) -> (i32, i32) {
    %c0_i32 = arith.constant 0 : i32
    %c0_i32_0 = arith.constant 0 : i32
    %c0_i32_1 = arith.constant 0 : i32
    return %c0_i32, %c0_i32_0 : i32, i32
  }
  func.func @transform_3(%arg0: i32, %arg1: i32) -> (i32, i32, i32) {
    %c0_i32 = arith.constant 0 : i32
    %c0_i32_0 = arith.constant 0 : i32
    return %arg0, %c0_i32, %arg1 : i32, i32, i32
  }
}

module attributes {stable_mosaic.version = 11 : i64} {
  func.func @kernel(%arg0: i32, %arg1: i32, %arg2: memref<1x8x82xbf16, #tpu.memory_space<vmem>>, %arg3: memref<1x8x72xbf16, #tpu.memory_space<vmem>>, %arg4: memref<2x82xbf16, #tpu.memory_space<vmem>>, %arg5: memref<1x8x1xf32, #tpu.memory_space<vmem>>, %arg6: memref<1x8x64xbf16, #tpu.memory_space<vmem>>, %arg7: memref<72x64xbf16, #tpu.memory_space<vmem>>) attributes {dimension_semantics = [#tpu.dimension_semantics<parallel>, #tpu.dimension_semantics<parallel>], iteration_bounds = array<i64: 2, 1>, scalar_prefetch = 0 : i64, scratch_operands = 1 : i64, tpu.core_type = #tpu.core_type<tc>, window_params = [{transform_indices = @transform_0, window_bounds = array<i64: 1, 8, 82>}, {transform_indices = @transform_1, window_bounds = array<i64: 1, 8, 72>}, {pipeline_mode = #tpu.pipeline_mode<synchronous>, transform_indices = @transform_2, window_bounds = array<i64: 2, 82>}, {transform_indices = @transform_3, window_bounds = array<i64: 1, 8, 1>}, {transform_indices = @transform_4, window_bounds = array<i64: 1, 8, 64>}]} {
    %c0 = arith.constant 0 : index
    %c0_0 = arith.constant 0 : index
    %c0_1 = arith.constant 0 : index
    %0 = vector.load %arg2[%c0, %c0_0, %c0_1] : memref<1x8x82xbf16, #tpu.memory_space<vmem>>, vector<1x8x82xbf16>
    %1 = vector.shape_cast %0 : vector<1x8x82xbf16> to vector<8x82xbf16>
    %c0_2 = arith.constant 0 : index
    %c0_3 = arith.constant 0 : index
    %2 = vector.load %arg4[%c0_2, %c0_3] : memref<2x82xbf16, #tpu.memory_space<vmem>>, vector<1x82xbf16>
    %3 = vector.broadcast %2 : vector<1x82xbf16> to vector<8x82xbf16>
    %4 = arith.mulf %1, %3 : vector<8x82xbf16>
    %c1 = arith.constant 1 : index
    %c0_4 = arith.constant 0 : index
    %5 = vector.load %arg4[%c1, %c0_4] : memref<2x82xbf16, #tpu.memory_space<vmem>>, vector<1x82xbf16>
    %6 = vector.broadcast %5 : vector<1x82xbf16> to vector<8x82xbf16>
    %7 = arith.mulf %1, %6 : vector<8x82xbf16>
    %8 = vector.extract_strided_slice %4 {offsets = [0, 0], sizes = [8, 64], strides = [1, 1]} : vector<8x82xbf16> to vector<8x64xbf16>
    %c0_5 = arith.constant 0 : index
    %c0_6 = arith.constant 0 : index
    %9 = vector.load %arg7[%c0_5, %c0_6] : memref<72x64xbf16, #tpu.memory_space<vmem>>, vector<8x64xbf16>
    tpu.vector_store %arg7[%c0_5, %c0_6], %8 {strides = array<i32>} : memref<72x64xbf16, #tpu.memory_space<vmem>>, vector<8x64xbf16>,
    %10 = vector.extract_strided_slice %1 {offsets = [0, 1], sizes = [8, 64], strides = [1, 1]} : vector<8x82xbf16> to vector<8x64xbf16>
    %c8 = arith.constant 8 : index
    %c0_7 = arith.constant 0 : index
    %11 = vector.load %arg7[%c8, %c0_7] : memref<72x64xbf16, #tpu.memory_space<vmem>>, vector<8x64xbf16>
    tpu.vector_store %arg7[%c8, %c0_7], %10 {strides = array<i32>} : memref<72x64xbf16, #tpu.memory_space<vmem>>, vector<8x64xbf16>,
    %12 = vector.extract_strided_slice %7 {offsets = [0, 2], sizes = [8, 64], strides = [1, 1]} : vector<8x82xbf16> to vector<8x64xbf16>
    %c16 = arith.constant 16 : index
    %c0_8 = arith.constant 0 : index
    %13 = vector.load %arg7[%c16, %c0_8] : memref<72x64xbf16, #tpu.memory_space<vmem>>, vector<8x64xbf16>
    tpu.vector_store %arg7[%c16, %c0_8], %12 {strides = array<i32>} : memref<72x64xbf16, #tpu.memory_space<vmem>>, vector<8x64xbf16>,
    %14 = vector.extract_strided_slice %4 {offsets = [0, 8], sizes = [8, 64], strides = [1, 1]} : vector<8x82xbf16> to vector<8x64xbf16>
    %c24 = arith.constant 24 : index
    %c0_9 = arith.constant 0 : index
    %15 = vector.load %arg7[%c24, %c0_9] : memref<72x64xbf16, #tpu.memory_space<vmem>>, vector<8x64xbf16>
    tpu.vector_store %arg7[%c24, %c0_9], %14 {strides = array<i32>} : memref<72x64xbf16, #tpu.memory_space<vmem>>, vector<8x64xbf16>,
    %16 = vector.extract_strided_slice %1 {offsets = [0, 9], sizes = [8, 64], strides = [1, 1]} : vector<8x82xbf16> to vector<8x64xbf16>
    %c32 = arith.constant 32 : index
    %c0_10 = arith.constant 0 : index
    %17 = vector.load %arg7[%c32, %c0_10] : memref<72x64xbf16, #tpu.memory_space<vmem>>, vector<8x64xbf16>
    tpu.vector_store %arg7[%c32, %c0_10], %16 {strides = array<i32>} : memref<72x64xbf16, #tpu.memory_space<vmem>>, vector<8x64xbf16>,
    %18 = vector.extract_strided_slice %7 {offsets = [0, 10], sizes = [8, 64], strides = [1, 1]} : vector<8x82xbf16> to vector<8x64xbf16>
    %c40 = arith.constant 40 : index
    %c0_11 = arith.constant 0 : index
    %19 = vector.load %arg7[%c40, %c0_11] : memref<72x64xbf16, #tpu.memory_space<vmem>>, vector<8x64xbf16>
    tpu.vector_store %arg7[%c40, %c0_11], %18 {strides = array<i32>} : memref<72x64xbf16, #tpu.memory_space<vmem>>, vector<8x64xbf16>,
    %20 = vector.extract_strided_slice %4 {offsets = [0, 16], sizes = [8, 64], strides = [1, 1]} : vector<8x82xbf16> to vector<8x64xbf16>
    %c48 = arith.constant 48 : index
    %c0_12 = arith.constant 0 : index
    %21 = vector.load %arg7[%c48, %c0_12] : memref<72x64xbf16, #tpu.memory_space<vmem>>, vector<8x64xbf16>
    tpu.vector_store %arg7[%c48, %c0_12], %20 {strides = array<i32>} : memref<72x64xbf16, #tpu.memory_space<vmem>>, vector<8x64xbf16>,
    %22 = vector.extract_strided_slice %1 {offsets = [0, 17], sizes = [8, 64], strides = [1, 1]} : vector<8x82xbf16> to vector<8x64xbf16>
    %c56 = arith.constant 56 : index
    %c0_13 = arith.constant 0 : index
    %23 = vector.load %arg7[%c56, %c0_13] : memref<72x64xbf16, #tpu.memory_space<vmem>>, vector<8x64xbf16>
    tpu.vector_store %arg7[%c56, %c0_13], %22 {strides = array<i32>} : memref<72x64xbf16, #tpu.memory_space<vmem>>, vector<8x64xbf16>,
    %24 = vector.extract_strided_slice %7 {offsets = [0, 18], sizes = [8, 64], strides = [1, 1]} : vector<8x82xbf16> to vector<8x64xbf16>
    %c64 = arith.constant 64 : index
    %c0_14 = arith.constant 0 : index
    %25 = vector.load %arg7[%c64, %c0_14] : memref<72x64xbf16, #tpu.memory_space<vmem>>, vector<8x64xbf16>
    tpu.vector_store %arg7[%c64, %c0_14], %24 {strides = array<i32>} : memref<72x64xbf16, #tpu.memory_space<vmem>>, vector<8x64xbf16>,
    %c0_15 = arith.constant 0 : index
    %c0_16 = arith.constant 0 : index
    %c0_17 = arith.constant 0 : index
    %26 = vector.load %arg3[%c0_15, %c0_16, %c0_17] : memref<1x8x72xbf16, #tpu.memory_space<vmem>>, vector<1x8x72xbf16>
    %27 = vector.shape_cast %26 : vector<1x8x72xbf16> to vector<8x72xbf16>
    %c0_18 = arith.constant 0 : index
    %c0_19 = arith.constant 0 : index
    %28 = vector.load %arg7[%c0_18, %c0_19] : memref<72x64xbf16, #tpu.memory_space<vmem>>, vector<72x64xbf16>
    %cst = arith.constant dense<0.000000e+00> : vector<8x64xf32>
    %29 = tpu.matmul %27, %28, %cst {dimension_numbers = #tpu.dot_dimension_numbers<[1], [0], [0], [1], [0, 0, 1, 1], [], []>} : vector<8x72xbf16>, vector<72x64xbf16>, vector<8x64xf32> -> vector<8x64xf32>
    %c0_20 = arith.constant 0 : index
    %c0_21 = arith.constant 0 : index
    %c0_22 = arith.constant 0 : index
    %30 = vector.load %arg5[%c0_20, %c0_21, %c0_22] : memref<1x8x1xf32, #tpu.memory_space<vmem>>, vector<1x8x1xf32>
    %31 = vector.shape_cast %30 : vector<1x8x1xf32> to vector<8x1xf32>
    %32 = vector.broadcast %31 : vector<8x1xf32> to vector<8x64xf32>
    %33 = arith.addf %29, %32 : vector<8x64xf32>
    %cst_23 = arith.constant 0.000000e+00 : f32
    %34 = vector.broadcast %cst_23 : f32 to vector<8x64xf32>
    %35 = arith.maximumf %33, %34 : vector<8x64xf32>
    %36 = arith.truncf %35 : vector<8x64xf32> to vector<8x64xbf16>
    %c0_24 = arith.constant 0 : index
    %c0_25 = arith.constant 0 : index
    %c0_26 = arith.constant 0 : index
    %37 = vector.load %arg6[%c0_24, %c0_25, %c0_26] : memref<1x8x64xbf16, #tpu.memory_space<vmem>>, vector<1x8x64xbf16>
    %38 = vector.shape_cast %37 : vector<1x8x64xbf16> to vector<8x64xbf16>
    %39 = vector.shape_cast %36 : vector<8x64xbf16> to vector<1x8x64xbf16>
    tpu.vector_store %arg6[%c0_24, %c0_25, %c0_26], %39 {strides = array<i32>} : memref<1x8x64xbf16, #tpu.memory_space<vmem>>, vector<1x8x64xbf16>,
    return
  }
  func.func @transform_0(%arg0: i32, %arg1: i32) -> (i32, i32, i32) {
    %c0_i32 = arith.constant 0 : i32
    %c0_i32_0 = arith.constant 0 : i32
    return %arg0, %arg1, %c0_i32 : i32, i32, i32
  }
  func.func @transform_1(%arg0: i32, %arg1: i32) -> (i32, i32, i32) {
    %c0_i32 = arith.constant 0 : i32
    %c0_i32_0 = arith.constant 0 : i32
    %c0_i32_1 = arith.constant 0 : i32
    return %arg1, %c0_i32, %c0_i32_0 : i32, i32, i32
  }
  func.func @transform_2(%arg0: i32, %arg1: i32) -> (i32, i32) {
    %c0_i32 = arith.constant 0 : i32
    %c0_i32_0 = arith.constant 0 : i32
    %c0_i32_1 = arith.constant 0 : i32
    return %c0_i32, %c0_i32_0 : i32, i32
  }
  func.func @transform_3(%arg0: i32, %arg1: i32) -> (i32, i32, i32) {
    %c0_i32 = arith.constant 0 : i32
    %c0_i32_0 = arith.constant 0 : i32
    %c0_i32_1 = arith.constant 0 : i32
    return %arg1, %c0_i32, %c0_i32_0 : i32, i32, i32
  }
  func.func @transform_4(%arg0: i32, %arg1: i32) -> (i32, i32, i32) {
    %c0_i32 = arith.constant 0 : i32
    %c0_i32_0 = arith.constant 0 : i32
    return %arg0, %arg1, %c0_i32 : i32, i32, i32
  }
}

</mosaic_0001>

<bundles_post_ra>
// kernel: _lambda_.8
= control target key start
LH: loop header
LB: loop body
LE: loop exit
PB: predicated region body
PF: predicated region fallthrough
CT: control target
= control target key end

     0   :  { %s447_s12 = smov 0   ;;  %s449_s13 = smov 0   ;;  %s486_s0 = inlined_call_operand.vmem [shape: bf16[2,16,256], index: 0, kind: input, shape index: {}]   ;;  %s487_s1 = inlined_call_operand.vmem [shape: bf16[8,16], index: 1, kind: input, shape index: {}]   ;;  %s488_s2 = inlined_call_operand.vmem [shape: f32[8,1], index: 2, kind: input, shape index: {}]   ;;  %s489_s3 = inlined_call_operand.vmem [shape: bf16[2,8,256], index: 3, kind: output, shape index: {}]  }
   0x1   :  { %s451_s14 = smov 0  }
   0x2 LB: > { %s25_s15 = sadd.s32 1, %s420_s13  ;;  %p355_p0 = scmp.ge.s32.totalorder %s424_s14, 1  ;;  %s424_s14 = sphi %s451_s14, %s13_s14   ;;  %s420_s13 = sphi %s449_s13, %s491_s13   ;;  %s416_s12 = sphi %s447_s12, %s490_s12  }
   0x3   : > { %p27_p1 = scmp.ge.s32.totalorder %s25_s15, 2  ;;  %p158_p2 = scmp.lt.s32.totalorder %s424_s14, 3 }
   0x5   : > { %s493_s15 = smov (%p27_p1, %s25_s15), 0  ;;  %p159_p3 = pnand %p355_p0, %p158_p2 }
   0x6   : > { %p191_p4 = scmp.lt.s32.totalorder (!%p159_p3), %s416_s12, 1 }
   0x7   : > { %162 = sbr.rel (%p159_p3) target bundleno = 156 (0x9c), region = 32 }
   0xc   : > { %v214_v0 = vld [vmem:[%s488_s2] sm:$0xff]  ;;  %v426_v1 = vmov 0   ;;  %s495_s12 = smov (!%p191_p4, %s416_s12), 1  ;;  %vm230_vm0 = vcmask 130048  }
   0xd   : > { %401 = vset.pattern.permute.xlu0 %v426_v1  ;;  %s372_s18 = sshll.u32 %s495_s12, 4  ;;  %v211_v8 = vld [vmem:[%s487_s1] sm:$0xf]  ;;  %s373_s24 = sshll.u32 %s495_s12, 3 }
   0xe   : > { %217 = vperm.xlu0 %401, %v214_v0   ;;  %s198_s21 = scalar_lea.vmem %s486_s0, %s372_s18  ;;  %s208_s27 = scalar_lea.vmem %s489_s3, %s373_s24 }
   0xf   : > { %v362_v2 = vld [vmem:[%s198_s21] sm:$0xf]  ;;  %v375_v3 = vld [vmem:[%s198_s21 + $0x4] sm:$0xf0]  ;;  %v374_v4 = vld [vmem:[%s198_s21 + $0x4] sm:$0xf] }
  0x10   : > { %v363_v5 = vor.u32 %v375_v3, %v362_v2  ;;  %v364_v6 = vld [vmem:[%s198_s21 + $0x8] sm:$0xf0] }
  0x11   : > { %v367_v7 = vor.u32 %v374_v4, %v364_v6 }
  0x12   : > { %241 = vmatpush.bf16.msra.mxu0 %v363_v5 }
  0x13   : > { %254 = vmatpush.bf16.msra.mxu1 %v367_v7 }
  0x15   : > { %368 = vmatmul.msk.bf16.vlgmr.msra.gmra.mxu0 %vm230_vm0, %v211_v8 }
  0x16   : > { %369 = vmatmul.msk.bf16.vlgmr.msra.gmra.mxu1 %vm230_vm0, %v211_v8 }
  0x80   : > { %v218_v9 = vpop.permute.xlu0 %217 }
  0x92   : > { %v243_v10 = vpop.f32.mrf.mxu0 }
  0x93   : > { %v244_v11 = vadd.f32 %v243_v10, %v218_v9  ;;  %v256_v12 = vpop.f32.mrf.mxu1 }
  0x94   : > { %v257_v13 = vadd.f32 %v256_v12, %v218_v9 }
  0x95   : > { %v260_v14 = vmax.f32 %v244_v11, 0.0 }
  0x96   : > { %v261_v15 = vmax.f32 %v257_v13, 0.0 }
  0x98   : > { %v262_v16 = vpack.c.bf16 %v261_v15, %v260_v14 }
  0x9a   : > { %263 = vst [vmem:[%s208_s27] sm:$0xff] %v262_v16  ;;  %v245_v17 = vpop.f32.mrf.mxu0 }
  0x9b   : > { %v258_v18 = vpop.f32.mrf.mxu1 }
  0x9c PF: > { %s13_s14 = sadd.s32 1, %s424_s14   ;;  %s490_s12 = smov %s420_s13 }
  0x9d   : > { %p10_p5 = scmp.ge.s32.totalorder %s13_s14, 4   ;;  %s491_s13 = smov %s493_s15 }
  0x9f   :  { %12 = sbr.rel (!%p10_p5) target bundleno = 2 (0x2), region = 62 }

// kernel: _lambda_.9
= control target key start
LH: loop header
LB: loop body
LE: loop exit
PB: predicated region body
PF: predicated region fallthrough
CT: control target
= control target key end

     0   :  { %s663_s15 = smov 0   ;;  %s665_s16 = smov 0   ;;  %s719_s0 = inlined_call_operand.vmem [shape: bf16[2,8,290], index: 0, kind: input, shape index: {}]   ;;  %s720_s1 = inlined_call_operand.vmem [shape: bf16[1,8,72], index: 1, kind: input, shape index: {}]   ;;  %s721_s2 = inlined_call_operand.vmem [shape: bf16[1,290], index: 2, kind: input, shape index: {}]   ;;  %s722_s3 = inlined_call_operand.vmem [shape: f32[1,8,1], index: 3, kind: input, shape index: {}]   ;;  %s723_s4 = inlined_call_operand.vmem [shape: bf16[2,8,64], index: 4, kind: output, shape index: {}]  }
   0x1   :  { %s667_s17 = smov 0  }
   0x2 LB: > { %s26_s18 = sadd.s32 1, %s622_s16  ;;  %p541_p0 = scmp.ge.s32.totalorder %s626_s17, 1  ;;  %s626_s17 = sphi %s667_s17, %s14_s17   ;;  %s622_s16 = sphi %s665_s16, %s725_s16   ;;  %s618_s15 = sphi %s663_s15, %s724_s15  }
   0x3   : > { %p28_p1 = scmp.ge.s32.totalorder %s26_s18, 2  ;;  %p200_p2 = scmp.lt.s32.totalorder %s626_s17, 3 }
   0x5   : > { %s727_s18 = smov (%p28_p1, %s26_s18), 0  ;;  %p201_p3 = pnand %p541_p0, %p200_p2 }
   0x6   : > { %p240_p4 = scmp.lt.s32.totalorder (!%p201_p3), %s618_s15, 1  ;;  %s628_s25 = smov (!%p201_p3), 119  }
   0x7   : > { %204 = sbr.rel (%p201_p3) target bundleno = 310 (0x136), region = 36  ;;  %s629_s26 = smov (!%p201_p3), 47  }
   0x8   : > { %s630_s27 = smov (!%p201_p3), 111   ;;  %s631_s28 = smov (!%p201_p3), 39  }
   0x9   : > { %s632_s29 = smov (!%p201_p3), 48   ;;  %s633_s30 = smov (!%p201_p3), 40  }
   0xa   : > { %s634_s5 = smov (!%p201_p3), 55   ;;  %s635_s6 = smov (!%p201_p3), 127  }
   0xb   : > { %s636_s7 = smov (!%p201_p3), 56  }
   0xc   : > { %v267_v0 = vld [vmem:[%s721_s2] sm:$0x7]  ;;  %s729_s15 = smov (!%p240_p4, %s618_s15), 1  ;;  %vm300_vm0 = vcmask 519168   ;;  %vm353_vm1 = vcmask 384000   ;;  %vm335_vm2 = vcmask 318464  }
   0xd   : > { %269 = vst [vmem:[#allocation1] ss:$9 sm:$0xff] %v267_v0  ;;  %s567_s21 = smul.u32 12, %s729_s15  ;;  %vm342_vm3 = vcmask 392192   ;;  %v367_v35 = vld [vmem:[%s722_s3] sm:$0xff]  ;;  %v637_v38 = vmov 0  }
   0xe   : > { %602 = vset.pattern.permute.xlu2 %v637_v38  ;;  %603 = vset.pattern.permute.xlu0 %v637_v38  ;;  %vm404_vm4 = vcmask 1043456   ;;  %vm320_vm5 = vcmask 326656   ;;  %vm310_vm6 = vcmask 449536   ;;  %vm297_vm7 = vcmask 457728   ;;  %v357_v57 = vld [vmem:[%s720_s1] sm:$0xf] }
   0xf   : > { %s248_s24 = scalar_lea.vmem %s719_s0, %s567_s21  ;;  %vm400_vm8 = vcmask 588800   ;;  %s543_s12 = sshll.u32 %s729_s15, 2 }
  0x10   : > { %v265_v1 = vld [vmem:[%s248_s24] sm:$0xff]  ;;  %v266_v13 = vld [vmem:[%s248_s24 + $0x8] sm:$0xf]  ;;  %s263_s19 = scalar_lea.vmem %s723_s4, %s543_s12 }
  0x11   : > { %346 = vrot.lane.b32.xlu1 %v265_v1, %s628_s25  ;;  %350 = vrot.lane.b32.xlu0 %v265_v1, %s629_s26  ;;  %v282_v8 = vunpack.c.l.bf16 %v265_v1  ;;  %v283_v11 = vunpack.c.h.bf16 %v265_v1  ;;  %v284_v16 = vunpack.c.l.bf16 %v266_v13 }
  0x12   : > { %324 = vrot.lane.b32.xlu2 %v265_v1, %s630_s27 }
  0x14   : > { %v270_v2 = vld [vmem:[#allocation1] sm:$0xff]  ;;  %v271_v3 = vld [vmem:[#allocation1 + $0x9] sm:$0xff]  ;;  %v272_v4 = vld [vmem:[#allocation1 + $0x12] sm:$0xff] }
  0x15   : > { %v273_v5 = vpack.i.b16 %v270_v2, %v270_v2  ;;  %v276_v6 = vpack.i.b16 %v271_v3, %v271_v3  ;;  %v279_v7 = vpack.i.b16 %v272_v4, %v272_v4 }
  0x17   : > { %v275_v9 = vperm.slane %v273_v5, 0  ;;  %v278_v10 = vperm.slane %v276_v6, 0  ;;  %v281_v12 = vperm.slane %v279_v7, 0 }
  0x19   : > { %v285_v14 = vunpack.c.l.bf16 %v275_v9  ;;  %v286_v15 = vunpack.c.l.bf16 %v278_v10  ;;  %v287_v17 = vunpack.c.l.bf16 %v281_v12  ;;  %330 = vrot.lane.b32.xlu1 %v265_v1, %s631_s28 }
  0x1a   : > { %332 = vrot.lane.b32.xlu2 %v266_v13, %s631_s28 }
  0x1b   : > { %v288_v18 = vmul.f32 %v285_v14, %v282_v8  ;;  %v289_v19 = vmul.f32 %v286_v15, %v283_v11  ;;  %v290_v21 = vmul.f32 %v287_v17, %v284_v16 }
  0x1d   : > { %v291_v20 = vpack.c.bf16 %v289_v19, %v288_v18  ;;  %v292_v22 = vpack.c.bf16 %v290_v21, %v290_v21 }
  0x1f   : > { %339 = vrot.lane.b32.xlu0 %v291_v20, %s632_s29 }
  0x21   : > { %315 = vrot.lane.b32.xlu1 %v291_v20, %s633_s30 }
  0x22   : > { %317 = vrot.lane.b32.xlu2 %v292_v22, %s633_s30 }
  0x27   : > { %307 = vrot.lane.b32.xlu0 %v265_v1, %s634_s5 }
  0x29   : > { %303 = vrot.lane.b32.xlu1 %v265_v1, %s635_s6 }
  0x2a   : > { %370 = vperm.xlu2 %602, %v367_v35  }
  0x2f   : > { %294 = vrot.lane.b32.xlu0 %v291_v20, %s636_s7 }
  0x6c   : > { %v325_v23 = vpop.permute.xlu2 %324 }
  0x6d   : > { %v326_v24 = vrot.slane %v325_v23, 4 }
  0x6f   : > { %328 = vst.msk [vmem:[#allocation2 + $0x10] sm:$0xf] %vm300_vm0, %v326_v24 }
  0x74   : > { %v333_v30 = vpop.permute.xlu2 %332 }
  0x7c   : > { %v318_v43 = vpop.permute.xlu2 %317 }
  0x83   : > { %v347_v25 = vpop.permute.xlu1 %346  ;;  %v351_v26 = vpop.permute.xlu0 %350 }
  0x84   : > { %349 = vst.msk [vmem:[#allocation2 + $0x1c] sm:$0xf] %vm300_vm0, %v347_v25  ;;  %v352_v27 = vrot.slane %v351_v26, 4  ;;  %v371_v58 = vpop.permute.xlu2 %370 }
  0x86   : > { %v354_v28 = vsel %vm353_vm1, %v351_v26, %v352_v27 }
  0x87   : > { %356 = vst.msk [vmem:[#allocation2 + $0x20] sm:$0xf] %vm300_vm0, %v354_v28 }
  0x8b   : > { %v331_v29 = vpop.permute.xlu1 %330 }
  0x8c   : > { %v334_v31 = vrot.slane %v331_v29, 4 }
  0x8e   : > { %v336_v32 = vsel %vm335_vm2, %v334_v31, %v333_v30  ;;  %v366_v34 = vld [vmem:[#allocation2 + $0x20] sm:$0xf] }
  0x8f   : > { %338 = vst.msk [vmem:[#allocation2 + $0x14] sm:$0xf] %vm300_vm0, %v336_v32  ;;  %v390_v37 = vunpack.c.l.b16 %v366_v34 }
  0x91   : > { %v340_v33 = vpop.permute.xlu0 %339  ;;  %v395_v40 = vpack.c.b16 %v390_v37, %v390_v37 }
  0x92   : > { %v341_v36 = vrot.slane %v340_v33, 4 }
  0x93   : > { %v406_v41 = vsel %vm404_vm4, %v395_v40, 0  ;;  %v316_v42 = vpop.permute.xlu1 %315 }
  0x94   : > { %v343_v39 = vsel %vm342_vm3, %v340_v33, %v341_v36  ;;  %411 = vmatpush.bf16.msra.mxu0 %v406_v41  ;;  %v319_v44 = vrot.slane %v316_v42, 4 }
  0x95   : > { %345 = vst.msk [vmem:[#allocation2 + $0x18] sm:$0xf] %vm300_vm0, %v343_v39 }
  0x96   : > { %v321_v46 = vsel %vm320_vm5, %v319_v44, %v318_v43  ;;  %v565_v51 = vld [vmem:[#allocation2 + $0x10] sm:$0xff] }
  0x97   : > { %323 = vst.msk [vmem:[#allocation2 + $0xc] sm:$0xf] %vm300_vm0, %v321_v46 }
  0x99   : > { %v308_v45 = vpop.permute.xlu0 %307 }
  0x9a   : > { %v309_v47 = vrot.slane %v308_v45, 4 }
  0x9b   : > { %v304_v50 = vpop.permute.xlu1 %303 }
  0x9c   : > { %v311_v48 = vsel %vm310_vm6, %v308_v45, %v309_v47  ;;  %v566_v49 = vld [vmem:[#allocation2 + $0x18] sm:$0xff]  ;;  %306 = vst.msk [vmem:[#allocation2 + $0x4] sm:$0xf] %vm300_vm0, %v304_v50 }
  0x9d   : > { %313 = vst.msk [vmem:[#allocation2 + $0x8] sm:$0xf] %vm300_vm0, %v311_v48  ;;  %412 = vmatpush.bf16.msra.mxu0 %v566_v49 }
  0xa1   : > { %v295_v52 = vpop.permute.xlu0 %294  ;;  %413 = vmatpush.bf16.msra.mxu0 %v565_v51 }
  0xa2   : > { %v296_v53 = vrot.slane %v295_v52, 4 }
  0xa4   : > { %v298_v54 = vsel %vm297_vm7, %v295_v52, %v296_v53  ;;  %v564_v55 = vld [vmem:[#allocation2 + $0x8] sm:$0xff] }
  0xa5   : > { %301 = vst.msk [vmem:[#allocation2] sm:$0xf] %vm300_vm0, %v298_v54  ;;  %414 = vmatpush.bf16.msra.mxu0 %v564_v55 }
  0xac   : > { %v563_v56 = vld [vmem:[#allocation2] sm:$0xff] }
  0xad   : > { %415 = vmatpush.bf16.msra.mxu0 %v563_v56 }
  0xb0   : > { %560 = vmatmul.msk.bf16.vlgmr.msra.gmra.mxu0 %vm400_vm8, %v357_v57 }
 0x12d   : > { %v417_v59 = vpop.f32.mrf.mxu0 }
 0x12e   : > { %v418_v60 = vadd.f32 %v417_v59, %v371_v58 }
 0x130   : > { %v421_v61 = vmax.f32 %v418_v60, 0.0 }
 0x132   : > { %v422_v62 = vpack.c.bf16 %v421_v61, %v421_v61 }
 0x134   : > { %423 = vst.msk [vmem:[%s263_s19] sm:$0xf] %vm300_vm0, %v422_v62 }
 0x135   : > { %v419_v63 = vpop.f32.mrf.mxu0 }
 0x136 PF: > { %s14_s17 = sadd.s32 1, %s626_s17   ;;  %s724_s15 = smov %s622_s16 }
 0x137   : > { %p11_p5 = scmp.ge.s32.totalorder %s14_s17, 4   ;;  %s725_s16 = smov %s727_s18 }
 0x139   :  { %13 = sbr.rel (!%p11_p5) target bundleno = 2 (0x2), region = 72 }

// kernel: _lambda_.10
= control target key start
LH: loop header
LB: loop body
LE: loop exit
PB: predicated region body
PF: predicated region fallthrough
CT: control target
= control target key end

     0   :  { %s563_s15 = smov 0   ;;  %s565_s16 = smov 0   ;;  %s625_s0 = inlined_call_operand.vmem [shape: bf16[2,8,64], index: 0, kind: input, shape index: {}]   ;;  %s626_s1 = inlined_call_operand.vmem [shape: bf16[32,8], index: 1, kind: input, shape index: {}]   ;;  %s627_s2 = inlined_call_operand.vmem [shape: f32[32,1], index: 2, kind: input, shape index: {}]   ;;  %s628_s3 = inlined_call_operand.vmem [shape: bf16[2,32,64], index: 3, kind: input, shape index: {}]   ;;  %s629_s4 = inlined_call_operand.vmem [shape: bf16[2,32,64], index: 4, kind: output, shape index: {}]  }
   0x1   :  { %s567_s17 = smov 0  }
   0x2 LB: > { %s26_s18 = sadd.s32 1, %s531_s16  ;;  %p454_p0 = scmp.ge.s32.totalorder %s535_s17, 1  ;;  %s535_s17 = sphi %s567_s17, %s14_s17   ;;  %s531_s16 = sphi %s565_s16, %s631_s16   ;;  %s527_s15 = sphi %s563_s15, %s630_s15  }
   0x3   : > { %p28_p1 = scmp.ge.s32.totalorder %s26_s18, 2  ;;  %p195_p2 = scmp.lt.s32.totalorder %s535_s17, 3 }
   0x5   : > { %s633_s18 = smov (%p28_p1, %s26_s18), 0  ;;  %p196_p3 = pnand %p454_p0, %p195_p2 }
   0x6   : > { %p234_p4 = scmp.lt.s32.totalorder (!%p196_p3), %s527_s15, 1 }
   0x7   : > { %199 = sbr.rel (%p196_p3) target bundleno = 164 (0xa4), region = 36 }
   0xc   : > { %v537_v0 = vmov 0   ;;  %v265_v1 = vld [vmem:[%s627_s2 + $0x10] sm:$0xff]  ;;  %v263_v2 = vld [vmem:[%s627_s2] sm:$0xff]  ;;  %s635_s15 = smov (!%p234_p4, %s527_s15), 1  ;;  %vm304_vm0 = vcmask 1043456   ;;  %v475_v6 = vld [vmem:[%s626_s1 + $0x8] sm:$0xff] }
   0xd   : > { %512 = vset.pattern.permute.xlu1 %v537_v0  ;;  %511 = vset.pattern.permute.xlu0 %v537_v0  ;;  %s455_s23 = sshll.u32 %s635_s15, 2  ;;  %v474_v4 = vld [vmem:[%s626_s1] sm:$0xff]  ;;  %v266_v7 = vld [vmem:[%s627_s2 + $0x18] sm:$0xff]  ;;  %v264_v8 = vld [vmem:[%s627_s2 + $0x8] sm:$0xff]  ;;  %vm297_vm1 = vcmask 64512   ;;  %s472_s9 = sshll.u32 %s635_s15, 4 }
   0xe   : > { %279 = vperm.xlu1 %512, %v265_v1   ;;  %269 = vperm.xlu0 %511, %v263_v2   ;;  %s240_s26 = scalar_lea.vmem %s625_s0, %s455_s23  ;;  %s248_s12 = scalar_lea.vmem %s628_s3, %s472_s9  ;;  %vm347_vm2 = vcmask 519168  }
   0xf   : > { %v262_v3 = vld [vmem:[%s240_s26] sm:$0xf]  ;;  %v484_v10 = vld [vmem:[%s248_s12 + $0x8] sm:$0xff]   ;;  %s256_s15 = scalar_lea.vmem %s629_s4, %s472_s9 }
  0x10   : > { %v306_v5 = vsel %vm304_vm0, %v262_v3, 0  ;;  %v477_v9 = vld [vmem:[%s248_s12] sm:$0xff]   ;;  %v482_v14 = vunpack.c.l.bf16 %v484_v10  ;;  %v483_v28 = vunpack.c.h.bf16 %v484_v10 }
  0x11   : > { %315 = vmatpush.bf16.msra.mxu0 %v306_v5  ;;  %485 = vmatpush.bf16.msra.mxu1 %v306_v5  ;;  %v478_v13 = vunpack.c.l.bf16 %v477_v9  ;;  %v479_v27 = vunpack.c.h.bf16 %v477_v9 }
  0x14   : > { %468 = vmatmul.msk.bf16.vlgmr.msra.gmra.mxu0 %vm297_vm1, %v474_v4  ;;  %469 = vmatmul.msk.bf16.vlgmr.msra.gmra.mxu1 %vm297_vm1, %v475_v6 }
  0x16   : > { %284 = vperm.xlu1 %512, %v266_v7   ;;  %274 = vperm.xlu0 %511, %v264_v8  }
  0x80   : > { %v280_v11 = vpop.permute.xlu1 %279  ;;  %v270_v12 = vpop.permute.xlu0 %269 }
  0x88   : > { %v285_v23 = vpop.permute.xlu1 %284  ;;  %v275_v24 = vpop.permute.xlu0 %274 }
  0x91   : > { %v317_v15 = vpop.f32.mrf.mxu0  ;;  %v322_v16 = vpop.f32.mrf.mxu1 }
  0x92   : > { %v318_v17 = vadd.f32 %v317_v15, %v270_v12  ;;  %v323_v18 = vadd.f32 %v322_v16, %v280_v11 }
  0x94   : > { %v335_v19 = vadd.f32 %v478_v13, %v318_v17  ;;  %v337_v20 = vadd.f32 %v482_v14, %v323_v18 }
  0x96   : > { %v339_v21 = vmax.f32 %v335_v19, 0.0  ;;  %v341_v22 = vmax.f32 %v337_v20, 0.0 }
  0x98   : > { %v343_v25 = vpack.c.bf16 %v339_v21, %v339_v21  ;;  %v345_v26 = vpack.c.bf16 %v341_v22, %v341_v22 }
  0x99   : > { %v319_v29 = vpop.f32.mrf.mxu0  ;;  %v324_v30 = vpop.f32.mrf.mxu1 }
  0x9a   : > { %348 = vst.msk [vmem:[%s256_s15] sm:$0xf] %vm347_vm2, %v343_v25  ;;  %v320_v31 = vadd.f32 %v319_v29, %v275_v24  ;;  %v325_v32 = vadd.f32 %v324_v30, %v285_v23 }
  0x9b   : > { %350 = vst.msk [vmem:[%s256_s15 + $0x8] sm:$0xf] %vm347_vm2, %v345_v26 }
  0x9c   : > { %v336_v33 = vadd.f32 %v479_v27, %v320_v31  ;;  %v338_v34 = vadd.f32 %v483_v28, %v325_v32 }
  0x9e   : > { %v340_v35 = vmax.f32 %v336_v33, 0.0  ;;  %v342_v36 = vmax.f32 %v338_v34, 0.0 }
  0xa0   : > { %v344_v37 = vpack.c.bf16 %v340_v35, %v340_v35  ;;  %v346_v38 = vpack.c.bf16 %v342_v36, %v342_v36 }
  0xa2   : > { %349 = vst.msk [vmem:[%s256_s15 + $0x4] sm:$0xf] %vm347_vm2, %v344_v37 }
  0xa3   : > { %351 = vst.msk [vmem:[%s256_s15 + $0xc] sm:$0xf] %vm347_vm2, %v346_v38 }
  0xa4 PF: > { %s14_s17 = sadd.s32 1, %s535_s17   ;;  %s630_s15 = smov %s531_s16 }
  0xa5   : > { %p11_p5 = scmp.ge.s32.totalorder %s14_s17, 4   ;;  %s631_s16 = smov %s633_s18 }
  0xa7   :  { %13 = sbr.rel (!%p11_p5) target bundleno = 2 (0x2), region = 69 }

// kernel: _lambda_.7
= control target key start
LH: loop header
LB: loop body
LE: loop exit
PB: predicated region body
PF: predicated region fallthrough
CT: control target
= control target key end

     0   :  { %s470_s12 = smov 0   ;;  %s472_s13 = smov 0   ;;  %s521_s0 = inlined_call_operand.vmem [shape: bf16[2,16,64], index: 0, kind: input, shape index: {}]   ;;  %s522_s1 = inlined_call_operand.vmem [shape: bf16[32,16], index: 1, kind: input, shape index: {}]   ;;  %s523_s2 = inlined_call_operand.vmem [shape: f32[32,1], index: 2, kind: input, shape index: {}]   ;;  %s524_s3 = inlined_call_operand.vmem [shape: bf16[2,32,64], index: 3, kind: output, shape index: {}]  }
   0x1   :  { %s474_s14 = smov 0  }
   0x2 LB: > { %s25_s15 = sadd.s32 1, %s443_s13  ;;  %p371_p0 = scmp.ge.s32.totalorder %s447_s14, 1  ;;  %s447_s14 = sphi %s474_s14, %s13_s14   ;;  %s443_s13 = sphi %s472_s13, %s526_s13   ;;  %s439_s12 = sphi %s470_s12, %s525_s12  }
   0x3   : > { %p27_p1 = scmp.ge.s32.totalorder %s25_s15, 2  ;;  %p156_p2 = scmp.lt.s32.totalorder %s447_s14, 3 }
   0x5   : > { %s528_s15 = smov (%p27_p1, %s25_s15), 0  ;;  %p157_p3 = pnand %p371_p0, %p156_p2 }
   0x6   : > { %p186_p4 = scmp.lt.s32.totalorder (!%p157_p3), %s439_s12, 1 }
   0x7   : > { %160 = sbr.rel (%p157_p3) target bundleno = 159 (0x9f), region = 32 }
   0xc   : > { %v211_v0 = vld [vmem:[%s523_s2 + $0x10] sm:$0xff]  ;;  %v449_v1 = vmov 0   ;;  %v209_v2 = vld [vmem:[%s523_s2] sm:$0xff]  ;;  %s530_s12 = smov (!%p186_p4, %s439_s12), 1  ;;  %v395_v5 = vld [vmem:[%s522_s1 + $0x8] sm:$0xff]  ;;  %vm249_vm0 = vcmask 130048  }
   0xd   : > { %424 = vset.pattern.permute.xlu1 %v449_v1  ;;  %423 = vset.pattern.permute.xlu0 %v449_v1  ;;  %s392_s20 = sshll.u32 %s530_s12, 3  ;;  %v394_v4 = vld [vmem:[%s522_s1] sm:$0xff]  ;;  %v212_v6 = vld [vmem:[%s523_s2 + $0x18] sm:$0xff]  ;;  %v210_v7 = vld [vmem:[%s523_s2 + $0x8] sm:$0xff]  ;;  %s393_s5 = sshll.u32 %s530_s12, 4  ;;  %vm279_vm1 = vcmask 519168  }
   0xe   : > { %225 = vperm.xlu1 %424, %v211_v0   ;;  %215 = vperm.xlu0 %423, %v209_v2   ;;  %s193_s23 = scalar_lea.vmem %s521_s0, %s392_s20  ;;  %s201_s8 = scalar_lea.vmem %s524_s3, %s393_s5 }
   0xf   : > { %v396_v3 = vld [vmem:[%s193_s23] sm:$0xff] }
  0x10   : > { %263 = vmatpush.bf16.msra.mxu0 %v396_v3  ;;  %397 = vmatpush.bf16.msra.mxu1 %v396_v3 }
  0x13   : > { %388 = vmatmul.msk.bf16.vlgmr.msra.gmra.mxu0 %vm249_vm0, %v394_v4  ;;  %389 = vmatmul.msk.bf16.vlgmr.msra.gmra.mxu1 %vm249_vm0, %v395_v5 }
  0x16   : > { %230 = vperm.xlu1 %424, %v212_v6   ;;  %220 = vperm.xlu0 %423, %v210_v7  }
  0x80   : > { %v226_v8 = vpop.permute.xlu1 %225  ;;  %v216_v9 = vpop.permute.xlu0 %215 }
  0x88   : > { %v231_v16 = vpop.permute.xlu1 %230  ;;  %v221_v17 = vpop.permute.xlu0 %220 }
  0x90   : > { %v265_v10 = vpop.f32.mrf.mxu0  ;;  %v270_v11 = vpop.f32.mrf.mxu1 }
  0x91   : > { %v266_v12 = vadd.f32 %v265_v10, %v216_v9  ;;  %v271_v13 = vadd.f32 %v270_v11, %v226_v8 }
  0x93   : > { %v275_v14 = vpack.c.bf16 %v266_v12, %v266_v12  ;;  %v277_v15 = vpack.c.bf16 %v271_v13, %v271_v13 }
  0x95   : > { %280 = vst.msk [vmem:[%s201_s8] sm:$0xf] %vm279_vm1, %v275_v14 }
  0x96   : > { %282 = vst.msk [vmem:[%s201_s8 + $0x8] sm:$0xf] %vm279_vm1, %v277_v15 }
  0x98   : > { %v267_v18 = vpop.f32.mrf.mxu0  ;;  %v272_v19 = vpop.f32.mrf.mxu1 }
  0x99   : > { %v268_v20 = vadd.f32 %v267_v18, %v221_v17  ;;  %v273_v21 = vadd.f32 %v272_v19, %v231_v16 }
  0x9b   : > { %v276_v22 = vpack.c.bf16 %v268_v20, %v268_v20  ;;  %v278_v23 = vpack.c.bf16 %v273_v21, %v273_v21 }
  0x9d   : > { %281 = vst.msk [vmem:[%s201_s8 + $0x4] sm:$0xf] %vm279_vm1, %v276_v22 }
  0x9e   : > { %283 = vst.msk [vmem:[%s201_s8 + $0xc] sm:$0xf] %vm279_vm1, %v278_v23 }
  0x9f PF: > { %s13_s14 = sadd.s32 1, %s447_s14   ;;  %s525_s12 = smov %s443_s13 }
  0xa0   : > { %p10_p5 = scmp.ge.s32.totalorder %s13_s14, 4   ;;  %s526_s13 = smov %s528_s15 }
  0xa2   :  { %12 = sbr.rel (!%p10_p5) target bundleno = 2 (0x2), region = 62 }

// kernel: _lambda_.11
= control target key start
LH: loop header
LB: loop body
LE: loop exit
PB: predicated region body
PF: predicated region fallthrough
CT: control target
= control target key end

     0   :  { %s415_s12 = smov 0   ;;  %s417_s13 = smov 0   ;;  %s454_s0 = inlined_call_operand.vmem [shape: bf16[2,32,64], index: 0, kind: input, shape index: {}]   ;;  %s455_s1 = inlined_call_operand.vmem [shape: bf16[8,32], index: 1, kind: input, shape index: {}]   ;;  %s456_s2 = inlined_call_operand.vmem [shape: f32[8,1], index: 2, kind: input, shape index: {}]   ;;  %s457_s3 = inlined_call_operand.vmem [shape: bf16[2,8,64], index: 3, kind: output, shape index: {}]  }
   0x1   :  { %s419_s14 = smov 0  }
   0x2 LB: > { %s25_s15 = sadd.s32 1, %s388_s13  ;;  %p326_p0 = scmp.ge.s32.totalorder %s392_s14, 1  ;;  %s392_s14 = sphi %s419_s14, %s13_s14   ;;  %s388_s13 = sphi %s417_s13, %s459_s13   ;;  %s384_s12 = sphi %s415_s12, %s458_s12  }
   0x3   : > { %p27_p1 = scmp.ge.s32.totalorder %s25_s15, 2  ;;  %p156_p2 = scmp.lt.s32.totalorder %s392_s14, 3 }
   0x5   : > { %s461_s15 = smov (%p27_p1, %s25_s15), 0  ;;  %p157_p3 = pnand %p326_p0, %p156_p2 }
   0x6   : > { %p185_p4 = scmp.lt.s32.totalorder (!%p157_p3), %s384_s12, 1 }
   0x7   : > { %160 = sbr.rel (%p157_p3) target bundleno = 157 (0x9d), region = 32 }
   0xc   : > { %v206_v0 = vld [vmem:[%s456_s2] sm:$0xff]  ;;  %v394_v1 = vmov 0   ;;  %s463_s12 = smov (!%p185_p4, %s384_s12), 1  ;;  %vm224_vm0 = vcmask 261120   ;;  %vm243_vm1 = vcmask 519168  }
   0xd   : > { %369 = vset.pattern.permute.xlu0 %v394_v1  ;;  %s341_s18 = sshll.u32 %s463_s12, 4  ;;  %v201_v4 = vld [vmem:[%s455_s1] sm:$0xf]  ;;  %s329_s24 = sshll.u32 %s463_s12, 2 }
   0xe   : > { %209 = vperm.xlu0 %369, %v206_v0   ;;  %s192_s21 = scalar_lea.vmem %s454_s0, %s341_s18  ;;  %s199_s27 = scalar_lea.vmem %s457_s3, %s329_s24 }
   0xf   : > { %v343_v2 = vld [vmem:[%s192_s21 + $0x8] sm:$0xff]  ;;  %v342_v3 = vld [vmem:[%s192_s21] sm:$0xff] }
  0x10   : > { %234 = vmatpush.bf16.msra.mxu0 %v343_v2 }
  0x14   : > { %235 = vmatpush.bf16.msra.mxu0 %v342_v3 }
  0x17   : > { %338 = vmatmul.msk.bf16.vlgmr.msra.gmra.mxu0 %vm224_vm0, %v201_v4 }
  0x80   : > { %v210_v5 = vpop.permute.xlu0 %209 }
  0x94   : > { %v237_v6 = vpop.f32.mrf.mxu0 }
  0x95   : > { %v238_v7 = vadd.f32 %v237_v6, %v210_v5 }
  0x97   : > { %v241_v8 = vmax.f32 %v238_v7, 0.0 }
  0x99   : > { %v242_v9 = vpack.c.bf16 %v241_v8, %v241_v8 }
  0x9b   : > { %244 = vst.msk [vmem:[%s199_s27] sm:$0xf] %vm243_vm1, %v242_v9 }
  0x9c   : > { %v239_v10 = vpop.f32.mrf.mxu0 }
  0x9d PF: > { %s13_s14 = sadd.s32 1, %s392_s14   ;;  %s458_s12 = smov %s388_s13 }
  0x9e   : > { %p10_p5 = scmp.ge.s32.totalorder %s13_s14, 4   ;;  %s459_s13 = smov %s461_s15 }
  0xa0   :  { %12 = sbr.rel (!%p10_p5) target bundleno = 2 (0x2), region = 62 }

// kernel: _lambda_.12
= control target key start
LH: loop header
LB: loop body
LE: loop exit
PB: predicated region body
PF: predicated region fallthrough
CT: control target
= control target key end

     0   :  { %s610_s15 = smov 0   ;;  %s612_s16 = smov 0   ;;  %s669_s0 = inlined_call_operand.vmem [shape: bf16[2,8,82], index: 0, kind: input, shape index: {}]   ;;  %s670_s1 = inlined_call_operand.vmem [shape: bf16[1,8,72], index: 1, kind: input, shape index: {}]   ;;  %s671_s2 = inlined_call_operand.vmem [shape: bf16[2,82], index: 2, kind: input, shape index: {}]   ;;  %s672_s3 = inlined_call_operand.vmem [shape: f32[1,8,1], index: 3, kind: input, shape index: {}]   ;;  %s673_s4 = inlined_call_operand.vmem [shape: bf16[2,8,64], index: 4, kind: output, shape index: {}]  }
   0x1   :  { %s614_s17 = smov 0  }
   0x2 LB: > { %s26_s18 = sadd.s32 1, %s570_s16  ;;  %p491_p0 = scmp.ge.s32.totalorder %s574_s17, 1  ;;  %s574_s17 = sphi %s614_s17, %s14_s17   ;;  %s570_s16 = sphi %s612_s16, %s675_s16   ;;  %s566_s15 = sphi %s610_s15, %s674_s15  }
   0x3   : > { %p28_p1 = scmp.ge.s32.totalorder %s26_s18, 2  ;;  %p198_p2 = scmp.lt.s32.totalorder %s574_s17, 3 }
   0x5   : > { %s677_s18 = smov (%p28_p1, %s26_s18), 0  ;;  %p199_p3 = pnand %p491_p0, %p198_p2 }
   0x6   : > { %p236_p4 = scmp.lt.s32.totalorder (!%p199_p3), %s566_s15, 1  ;;  %s576_s25 = smov (!%p199_p3), 111  }
   0x7   : > { %202 = sbr.rel (%p199_p3) target bundleno = 306 (0x132), region = 36  ;;  %s577_s26 = smov (!%p199_p3), 110  }
   0x8   : > { %s578_s27 = smov (!%p199_p3), 118   ;;  %s579_s28 = smov (!%p199_p3), 119  }
   0x9   : > { %s580_s29 = smov (!%p199_p3), 112   ;;  %s581_s30 = smov (!%p199_p3), 126  }
   0xa   : > { %s582_s5 = smov (!%p199_p3), 127   ;;  %s583_s6 = smov (!%p199_p3), 120  }
   0xc   : > { %v260_v0 = vld [vmem:[%s671_s2] sm:$0x1]  ;;  %s679_s15 = smov (!%p236_p4, %s566_s15), 1  ;;  %vm276_vm0 = vcmask 519168   ;;  %v584_v20 = vmov 0   ;;  %vm360_vm1 = vcmask 1043456  }
   0xd   : > { %v269_v1 = vshrl.u32 %v260_v0, 16  ;;  %v262_v2 = vpack.i.b16 %v260_v0, %v260_v0  ;;  %s492_s21 = sshll.u32 %s679_s15, 2  ;;  %v323_v18 = vld [vmem:[%s672_s3] sm:$0xff]  ;;  %550 = vset.pattern.permute.xlu2 %v584_v20  ;;  %551 = vset.pattern.permute.xlu0 %v584_v20  ;;  %vm356_vm2 = vcmask 588800  }
   0xe   : > { %s242_s24 = scalar_lea.vmem %s669_s0, %s492_s21  ;;  %v313_v32 = vld [vmem:[%s670_s1] sm:$0xf]  ;;  %s257_s13 = scalar_lea.vmem %s673_s4, %s492_s21 }
   0xf   : > { %v270_v3 = vpack.i.b16 %v269_v1, %v269_v1  ;;  %v264_v4 = vperm.slane %v262_v2, 0  ;;  %v259_v7 = vld [vmem:[%s242_s24] sm:$0xf] }
  0x10   : > { %305 = vrot.lane.b32.xlu1 %v259_v7, %s576_s25  ;;  %v265_v8 = vunpack.c.l.bf16 %v259_v7 }
  0x11   : > { %v272_v5 = vperm.slane %v270_v3, 0  ;;  %v266_v6 = vunpack.c.l.bf16 %v264_v4 }
  0x13   : > { %v273_v9 = vunpack.c.l.bf16 %v272_v5  ;;  %v267_v11 = vmul.f32 %v266_v6, %v265_v8 }
  0x15   : > { %v274_v10 = vmul.f32 %v273_v9, %v265_v8  ;;  %v268_v13 = vpack.c.bf16 %v267_v11, %v267_v11 }
  0x17   : > { %v275_v12 = vpack.c.bf16 %v274_v10, %v274_v10  ;;  %277 = vst.msk [vmem:[#allocation2] sm:$0xf] %vm276_vm0, %v268_v13 }
  0x18   : > { %293 = vrot.lane.b32.xlu1 %v259_v7, %s579_s28 }
  0x19   : > { %309 = vrot.lane.b32.xlu0 %v275_v12, %s577_s26  ;;  %297 = vrot.lane.b32.xlu2 %v275_v12, %s578_s27 }
  0x20   : > { %279 = vrot.lane.b32.xlu1 %v259_v7, %s582_s5 }
  0x21   : > { %301 = vrot.lane.b32.xlu0 %v268_v13, %s580_s29  ;;  %284 = vrot.lane.b32.xlu2 %v275_v12, %s581_s30 }
  0x29   : > { %289 = vrot.lane.b32.xlu0 %v268_v13, %s583_s6  ;;  %326 = vperm.xlu2 %550, %v323_v18  }
  0x73   : > { %v298_v14 = vpop.permute.xlu2 %297 }
  0x74   : > { %300 = vst.msk [vmem:[#allocation2 + $0x14] sm:$0xf] %vm276_vm0, %v298_v14 }
  0x7b   : > { %v285_v15 = vpop.permute.xlu2 %284 }
  0x7c   : > { %287 = vst.msk [vmem:[#allocation2 + $0x8] sm:$0xf] %vm276_vm0, %v285_v15 }
  0x82   : > { %v306_v16 = vpop.permute.xlu1 %305 }
  0x83   : > { %308 = vst.msk [vmem:[#allocation2 + $0x1c] sm:$0xf] %vm276_vm0, %v306_v16  ;;  %v327_v33 = vpop.permute.xlu2 %326 }
  0x8a   : > { %v294_v19 = vpop.permute.xlu1 %293 }
  0x8b   : > { %v310_v17 = vpop.permute.xlu0 %309  ;;  %296 = vst.msk [vmem:[#allocation2 + $0x10] sm:$0xf] %vm276_vm0, %v294_v19 }
  0x8c   : > { %312 = vst.msk [vmem:[#allocation2 + $0x20] sm:$0xf] %vm276_vm0, %v310_v17 }
  0x92   : > { %v280_v24 = vpop.permute.xlu1 %279  ;;  %v515_v29 = vld [vmem:[#allocation2 + $0x10] sm:$0xff] }
  0x93   : > { %v302_v21 = vpop.permute.xlu0 %301  ;;  %v322_v22 = vld [vmem:[#allocation2 + $0x20] sm:$0xf]  ;;  %282 = vst.msk [vmem:[#allocation2 + $0x4] sm:$0xf] %vm276_vm0, %v280_v24 }
  0x94   : > { %304 = vst.msk [vmem:[#allocation2 + $0x18] sm:$0xf] %vm276_vm0, %v302_v21  ;;  %v346_v23 = vunpack.c.l.b16 %v322_v22 }
  0x96   : > { %v351_v25 = vpack.c.b16 %v346_v23, %v346_v23 }
  0x98   : > { %v362_v26 = vsel %vm360_vm1, %v351_v25, 0 }
  0x99   : > { %367 = vmatpush.bf16.msra.mxu0 %v362_v26 }
  0x9a   : > { %v513_v31 = vld [vmem:[#allocation2] sm:$0xff] }
  0x9b   : > { %v290_v27 = vpop.permute.xlu0 %289  ;;  %v516_v28 = vld [vmem:[#allocation2 + $0x18] sm:$0xff] }
  0x9c   : > { %292 = vst.msk [vmem:[#allocation2 + $0xc] sm:$0xf] %vm276_vm0, %v290_v27 }
  0x9d   : > { %368 = vmatpush.bf16.msra.mxu0 %v516_v28 }
  0xa1   : > { %369 = vmatpush.bf16.msra.mxu0 %v515_v29 }
  0xa3   : > { %v514_v30 = vld [vmem:[#allocation2 + $0x8] sm:$0xff] }
  0xa5   : > { %370 = vmatpush.bf16.msra.mxu0 %v514_v30 }
  0xa9   : > { %371 = vmatpush.bf16.msra.mxu0 %v513_v31 }
  0xac   : > { %510 = vmatmul.msk.bf16.vlgmr.msra.gmra.mxu0 %vm356_vm2, %v313_v32 }
 0x129   : > { %v373_v34 = vpop.f32.mrf.mxu0 }
 0x12a   : > { %v374_v35 = vadd.f32 %v373_v34, %v327_v33 }
 0x12c   : > { %v377_v36 = vmax.f32 %v374_v35, 0.0 }
 0x12e   : > { %v378_v37 = vpack.c.bf16 %v377_v36, %v377_v36 }
 0x130   : > { %379 = vst.msk [vmem:[%s257_s13] sm:$0xf] %vm276_vm0, %v378_v37 }
 0x131   : > { %v375_v38 = vpop.f32.mrf.mxu0 }
 0x132 PF: > { %s14_s17 = sadd.s32 1, %s574_s17   ;;  %s674_s15 = smov %s570_s16 }
 0x133   : > { %p11_p5 = scmp.ge.s32.totalorder %s14_s17, 4   ;;  %s675_s16 = smov %s677_s18 }
 0x135   :  { %13 = sbr.rel (!%p11_p5) target bundleno = 2 (0x2), region = 72 }

</bundles_post_ra>
